<compile_context>
chip_gen: v5e
topology: v5e:2x2
jax: 0.10.0
libtpu: 0.0.40
codegen_flags: <defaults>
</compile_context>

<pallas_src>
import jax
import jax.numpy as jnp
from jax.experimental import pallas as pl
from jax.experimental.pallas import tpu as pltpu


def _pick_row_tile(OH, OW, N, per_row_bytes, resident_bytes, budget_bytes,
                   max_rows=4096):
    """Largest output-row tile TOH (divisor of OH, sublane-friendly) whose
    per-step VMEM footprint fits the budget; also ensures >= 2 grid steps when
    the shape allows (v7x has two TensorCores)."""
    divisors = [t for t in range(OH, 0, -1)
                if OH % t == 0 and ((t * OW) % 8 == 0 or t == OH)]
    choice = None
    for t in divisors:
        if t * OW <= max_rows and resident_bytes + t * OW * per_row_bytes <= budget_bytes:
            choice = t
            break
    if choice is None:
        # Smallest legal tile; may still exceed budget for enormous images.
        # TODO(synk): halo-tile the input along H instead of keeping it resident.
        choice = divisors[-1]
    # Make sure there are at least 2 parallel grid steps when possible (v7x 2 TCs).
    if N * (OH // choice) < 2:
        multi = [t for t in divisors if OH // t >= 2]
        if multi:
            choice = multi[0]
    return choice


def _make_conv_kernel(KH, KW, C1, OW, TOH, stride, dilation, negative_slope):
    taps = [(kh, kw) for kh in range(KH) for kw in range(KW)]
    M = TOH * OW

    def kernel(x_ref, w_ref, b_ref, o_ref):
        # x_ref: (Hp, Wp, C1)        padded NHWC image of one batch element
        # w_ref: (KH*KW*C1, TC2)     BN-folded conv weights (tap-merged K dim)
        # b_ref: (1, TC2)            BN-folded bias (f32)
        # o_ref: (M, TC2)            output slab (compute dtype)
        row0 = pl.program_id(1) * (TOH * stride)
        if (TOH * stride) % 8 == 0:
            row0 = pl.multiple_of(row0, 8)   # alignment hint for the row slices

        # Gather the KH*KW shifted patches and merge them into one im2col tile
        # along the contraction (lane) dim -> single MXU matmul with K=KH*KW*C1.
        pieces = []
        for kh, kw in taps:
            h0 = row0 + kh * dilation
            w0 = kw * dilation
            if stride == 1:
                patch = x_ref[pl.ds(h0, TOH), pl.ds(w0, OW), :]
            else:
                # TODO(synk): stride>1 uses a sublane-strided read; pre-splitting
                # into stride phases (space-to-depth) in the wrapper would give
                # dense loads.  Not exercised by the module defaults (s=1).
                patch = x_ref[pl.ds(h0, TOH, stride), pl.ds(w0, OW, stride), :]
            pieces.append(patch.reshape(M, C1))
        col = pieces[0] if len(pieces) == 1 else jnp.concatenate(pieces, axis=-1)

        y = jnp.dot(col, w_ref[...], preferred_element_type=jnp.float32)
        y = y + b_ref[...]
        if negative_slope is not None:
            y = jnp.where(y > 0, y, negative_slope * y)
        o_ref[...] = y.astype(o_ref.dtype)

    return kernel


def conv_bn_leakyrelu(x_nchw, weight, conv_bias, gamma, beta, run_mean, run_var,
                      *, stride=1, padding=0, dilation=1, eps=1e-5, act=True,
                      compute_dtype=jnp.bfloat16):
    """Fused Conv2d(groups=1) + BatchNorm2d(eval) + LeakyReLU(0.1).

    Returns the result in `compute_dtype` (bf16 by default) in NCHW layout.
    """
    N, C1, H, W = x_nchw.shape
    C2, C1w, KH, KW = weight.shape
    assert C1w == C1, "grouped conv (g>1) not supported"
    # TODO(synk): grouped convolution (g>1) has no clean single-matmul mapping;
    # module default g=1 only.

    OH = (H + 2 * padding - dilation * (KH - 1) - 1) // stride + 1
    OW = (W + 2 * padding - dilation * (KW - 1) - 1) // stride + 1
    C2p = ((C2 + 127) // 128) * 128            # lane-dense output channels
    Kc = KH * KW * C1                          # merged contraction depth

    # ---- activations: NHWC, spatial zero pad, compute dtype (single copy) ----
    x = jnp.transpose(x_nchw, (0, 2, 3, 1))
    if padding:
        x = jnp.pad(x, ((0, 0), (padding, padding), (padding, padding), (0, 0)))
    x = x.astype(compute_dtype)
    Hp, Wp = x.shape[1], x.shape[2]

    # ---- fold BN (inference running stats) into weight / bias on the host ----
    scale = gamma / jnp.sqrt(run_var + eps)                        # (C2,) f32
    w = jnp.transpose(weight, (2, 3, 1, 0)).reshape(KH * KW, C1, C2)
    w = (w * scale[None, None, :]).reshape(Kc, C2).astype(compute_dtype)
    w = jnp.pad(w, ((0, 0), (0, C2p - C2)))                        # (Kc, C2p)
    bias = (conv_bias - run_mean) * scale + beta
    bias = jnp.pad(bias.astype(jnp.float32), (0, C2p - C2)).reshape(1, C2p)

    # ---- tiling: output-channel tile + VMEM-budget-aware row tile ----
    TC2 = 256 if (C2p % 256 == 0) else 128
    n_c2 = C2p // TC2

    csize = jnp.dtype(compute_dtype).itemsize
    phys_vmem = 64 << 20                       # conservative fallback (v7x-sized)
    try:
        cap = getattr(pltpu.get_tpu_info(), "vmem_capacity_bytes", None)
        if cap:
            phys_vmem = int(cap)
    except Exception:
        pass
    # Double-buffered residents (whole padded image + one weight/bias tile).
    resident_bytes = 2 * Hp * Wp * C1 * csize + 2 * (Kc * TC2 * csize + TC2 * 4)
    # Per output row: double-buffered output + f32 matmul result + im2col tile.
    per_row_bytes = 2 * TC2 * csize + TC2 * 4 + Kc * csize
    TOH = _pick_row_tile(OH, OW, N, per_row_bytes, resident_bytes,
                         int(phys_vmem * 0.6))
    n_rows = OH // TOH
    M_tile = TOH * OW

    vmem_need = resident_bytes + M_tile * per_row_bytes + (4 << 20)
    vmem_limit = int(min(max(vmem_need, 32 << 20), int(phys_vmem * 0.9)))

    kernel = _make_conv_kernel(KH, KW, C1, OW, TOH, stride, dilation,
                               0.1 if act else None)

    cost = pl.CostEstimate(
        flops=2 * N * OH * OW * Kc * C2p,
        transcendentals=0,
        bytes_accessed=(x.size * csize + w.size * csize + bias.size * 4
                        + N * OH * OW * C2p * csize))

    out = pl.pallas_call(
        kernel,
        out_shape=jax.ShapeDtypeStruct((N, OH * OW, C2p), compute_dtype),
        grid_spec=pltpu.PrefetchScalarGridSpec(
            num_scalar_prefetch=0,
            grid=(N, n_rows, n_c2),
            in_specs=[
                # Whole padded image; block index constant along (j, c) so it is
                # DMA'd into VMEM once per batch element.
                pl.BlockSpec((None, Hp, Wp, C1), lambda n, j, c: (n, 0, 0, 0)),
                # BN-folded, tap-merged weights: one output-channel tile resident.
                pl.BlockSpec((Kc, TC2), lambda n, j, c: (0, c)),
                pl.BlockSpec((1, TC2), lambda n, j, c: (0, c)),
            ],
            out_specs=pl.BlockSpec((None, M_tile, TC2), lambda n, j, c: (n, j, c)),
        ),
        compiler_params=pltpu.CompilerParams(
            dimension_semantics=("parallel", "parallel", "parallel"),
            vmem_limit_bytes=vmem_limit),
        cost_estimate=cost,
    )(x, w, bias)

    out = out.reshape(N, OH, OW, C2p)[..., :C2]        # drop lane padding
    return jnp.transpose(out, (0, 3, 1, 2))            # back to NCHW


def _reference(x, weight, conv_bias, gamma, beta, mean, var,
               *, stride, padding, dilation, eps=1e-5):
    y = jax.lax.conv_general_dilated(
        x, weight, window_strides=(stride, stride),
        padding=((padding, padding), (padding, padding)),
        rhs_dilation=(dilation, dilation),
        dimension_numbers=("NCHW", "OIHW", "NCHW"))
    y = y + conv_bias.reshape(1, -1, 1, 1)
    y = (y - mean.reshape(1, -1, 1, 1)) / jnp.sqrt(var.reshape(1, -1, 1, 1) + eps)
    y = y * gamma.reshape(1, -1, 1, 1) + beta.reshape(1, -1, 1, 1)
    return jnp.where(y > 0, y, 0.1 * y)


if __name__ == "__main__":
    # Conv(c1=4, c2=8, k=3, s=1, padding=1) on x: (2, 4, 16, 16).
    # BatchNorm uses inference (running-stats) semantics, i.e. module.eval().
    c1, c2, k, s, p, d = 4, 8, 3, 1, 1, 1
    key = jax.random.PRNGKey(0)
    kx, kwt, kb, kg, kbe, km, kv = jax.random.split(key, 7)

    x = jax.random.normal(kx, (2, c1, 16, 16), dtype=jnp.float32)
    weight = 0.1 * jax.random.normal(kwt, (c2, c1, k, k), dtype=jnp.float32)
    conv_bias = 0.1 * jax.random.normal(kb, (c2,), dtype=jnp.float32)
    gamma = 1.0 + 0.1 * jax.random.normal(kg, (c2,), dtype=jnp.float32)
    beta = 0.1 * jax.random.normal(kbe, (c2,), dtype=jnp.float32)
    run_mean = 0.1 * jax.random.normal(km, (c2,), dtype=jnp.float32)
    run_var = jax.random.uniform(kv, (c2,), minval=0.5, maxval=1.5, dtype=jnp.float32)

    ref = _reference(x, weight, conv_bias, gamma, beta, run_mean, run_var,
                     stride=s, padding=p, dilation=d)

    # Strict check: identical kernel with f32 compute (matches module numerics).
    out_f32 = conv_bn_leakyrelu(x, weight, conv_bias, gamma, beta, run_mean,
                                run_var, stride=s, padding=p, dilation=d,
                                compute_dtype=jnp.float32)
    out_f32 = jax.block_until_ready(out_f32)
    assert out_f32.shape == ref.shape == (2, c2, 16, 16)
    assert float(jnp.max(jnp.abs(out_f32 - ref))) < 1e-4

    # Default (performance) path: bf16 activations/weights/output, f32 accumulation.
    out = conv_bn_leakyrelu(x, weight, conv_bias, gamma, beta, run_mean, run_var,
                            stride=s, padding=p, dilation=d)
    out = jax.block_until_ready(out)
    assert out.shape == ref.shape
    # bf16 input/weight/output rounding tolerance.
    assert float(jnp.max(jnp.abs(out - ref))) < 5e-2

    print("KERNEL_OK")
</pallas_src>

<mosaic_0001>
module attributes {stable_mosaic.version = 11 : i64} {
  func.func @kernel(%arg0: i32, %arg1: i32, %arg2: i32, %arg3: memref<1x18x18x4xf32, #tpu.memory_space<vmem>>, %arg4: memref<36x128xf32, #tpu.memory_space<vmem>>, %arg5: memref<1x128xf32, #tpu.memory_space<vmem>>, %arg6: memref<1x256x128xf32, #tpu.memory_space<vmem>>) attributes {dimension_semantics = [#tpu.dimension_semantics<parallel>, #tpu.dimension_semantics<parallel>, #tpu.dimension_semantics<parallel>], iteration_bounds = array<i64: 2, 1, 1>, scalar_prefetch = 0 : i64, scratch_operands = 0 : i64, tpu.core_type = #tpu.core_type<tc>, window_params = [{transform_indices = @transform_0, window_bounds = array<i64: 1, 18, 18, 4>}, {transform_indices = @transform_1, window_bounds = array<i64: 36, 128>}, {transform_indices = @transform_2, window_bounds = array<i64: 1, 128>}, {transform_indices = @transform_3, window_bounds = array<i64: 1, 256, 128>}]} {
    %c16_i32 = arith.constant 16 : i32
    %0 = arith.muli %arg1, %c16_i32 : i32
    %1 = tpu.assume_multiple %0, 8 : i32
    %c0_i32 = arith.constant 0 : i32
    %2 = arith.addi %1, %c0_i32 : i32
    %c0 = arith.constant 0 : index
    %3 = arith.index_cast %2 : i32 to index
    %c0_0 = arith.constant 0 : index
    %c0_1 = arith.constant 0 : index
    %4 = vector.load %arg3[%c0, %3, %c0_0, %c0_1] : memref<1x18x18x4xf32, #tpu.memory_space<vmem>>, vector<1x16x16x4xf32>
    %5 = vector.shape_cast %4 : vector<1x16x16x4xf32> to vector<16x16x4xf32>
    %6 = vector.shape_cast %5 : vector<16x16x4xf32> to vector<256x4xf32>
    %c0_i32_2 = arith.constant 0 : i32
    %7 = arith.addi %1, %c0_i32_2 : i32
    %c0_3 = arith.constant 0 : index
    %8 = arith.index_cast %7 : i32 to index
    %c1 = arith.constant 1 : index
    %c0_4 = arith.constant 0 : index
    %9 = vector.load %arg3[%c0_3, %8, %c1, %c0_4] : memref<1x18x18x4xf32, #tpu.memory_space<vmem>>, vector<1x16x16x4xf32>
    %10 = vector.shape_cast %9 : vector<1x16x16x4xf32> to vector<16x16x4xf32>
    %11 = vector.shape_cast %10 : vector<16x16x4xf32> to vector<256x4xf32>
    %c0_i32_5 = arith.constant 0 : i32
    %12 = arith.addi %1, %c0_i32_5 : i32
    %c0_6 = arith.constant 0 : index
    %13 = arith.index_cast %12 : i32 to index
    %c2 = arith.constant 2 : index
    %c0_7 = arith.constant 0 : index
    %14 = vector.load %arg3[%c0_6, %13, %c2, %c0_7] : memref<1x18x18x4xf32, #tpu.memory_space<vmem>>, vector<1x16x16x4xf32>
    %15 = vector.shape_cast %14 : vector<1x16x16x4xf32> to vector<16x16x4xf32>
    %16 = vector.shape_cast %15 : vector<16x16x4xf32> to vector<256x4xf32>
    %c1_i32 = arith.constant 1 : i32
    %17 = arith.addi %1, %c1_i32 : i32
    %c0_8 = arith.constant 0 : index
    %18 = arith.index_cast %17 : i32 to index
    %c0_9 = arith.constant 0 : index
    %c0_10 = arith.constant 0 : index
    %19 = vector.load %arg3[%c0_8, %18, %c0_9, %c0_10] : memref<1x18x18x4xf32, #tpu.memory_space<vmem>>, vector<1x16x16x4xf32>
    %20 = vector.shape_cast %19 : vector<1x16x16x4xf32> to vector<16x16x4xf32>
    %21 = vector.shape_cast %20 : vector<16x16x4xf32> to vector<256x4xf32>
    %c1_i32_11 = arith.constant 1 : i32
    %22 = arith.addi %1, %c1_i32_11 : i32
    %c0_12 = arith.constant 0 : index
    %23 = arith.index_cast %22 : i32 to index
    %c1_13 = arith.constant 1 : index
    %c0_14 = arith.constant 0 : index
    %24 = vector.load %arg3[%c0_12, %23, %c1_13, %c0_14] : memref<1x18x18x4xf32, #tpu.memory_space<vmem>>, vector<1x16x16x4xf32>
    %25 = vector.shape_cast %24 : vector<1x16x16x4xf32> to vector<16x16x4xf32>
    %26 = vector.shape_cast %25 : vector<16x16x4xf32> to vector<256x4xf32>
    %c1_i32_15 = arith.constant 1 : i32
    %27 = arith.addi %1, %c1_i32_15 : i32
    %c0_16 = arith.constant 0 : index
    %28 = arith.index_cast %27 : i32 to index
    %c2_17 = arith.constant 2 : index
    %c0_18 = arith.constant 0 : index
    %29 = vector.load %arg3[%c0_16, %28, %c2_17, %c0_18] : memref<1x18x18x4xf32, #tpu.memory_space<vmem>>, vector<1x16x16x4xf32>
    %30 = vector.shape_cast %29 : vector<1x16x16x4xf32> to vector<16x16x4xf32>
    %31 = vector.shape_cast %30 : vector<16x16x4xf32> to vector<256x4xf32>
    %c2_i32 = arith.constant 2 : i32
    %32 = arith.addi %1, %c2_i32 : i32
    %c0_19 = arith.constant 0 : index
    %33 = arith.index_cast %32 : i32 to index
    %c0_20 = arith.constant 0 : index
    %c0_21 = arith.constant 0 : index
    %34 = vector.load %arg3[%c0_19, %33, %c0_20, %c0_21] : memref<1x18x18x4xf32, #tpu.memory_space<vmem>>, vector<1x16x16x4xf32>
    %35 = vector.shape_cast %34 : vector<1x16x16x4xf32> to vector<16x16x4xf32>
    %36 = vector.shape_cast %35 : vector<16x16x4xf32> to vector<256x4xf32>
    %c2_i32_22 = arith.constant 2 : i32
    %37 = arith.addi %1, %c2_i32_22 : i32
    %c0_23 = arith.constant 0 : index
    %38 = arith.index_cast %37 : i32 to index
    %c1_24 = arith.constant 1 : index
    %c0_25 = arith.constant 0 : index
    %39 = vector.load %arg3[%c0_23, %38, %c1_24, %c0_25] : memref<1x18x18x4xf32, #tpu.memory_space<vmem>>, vector<1x16x16x4xf32>
    %40 = vector.shape_cast %39 : vector<1x16x16x4xf32> to vector<16x16x4xf32>
    %41 = vector.shape_cast %40 : vector<16x16x4xf32> to vector<256x4xf32>
    %c2_i32_26 = arith.constant 2 : i32
    %42 = arith.addi %1, %c2_i32_26 : i32
    %c0_27 = arith.constant 0 : index
    %43 = arith.index_cast %42 : i32 to index
    %c2_28 = arith.constant 2 : index
    %c0_29 = arith.constant 0 : index
    %44 = vector.load %arg3[%c0_27, %43, %c2_28, %c0_29] : memref<1x18x18x4xf32, #tpu.memory_space<vmem>>, vector<1x16x16x4xf32>
    %45 = vector.shape_cast %44 : vector<1x16x16x4xf32> to vector<16x16x4xf32>
    %46 = vector.shape_cast %45 : vector<16x16x4xf32> to vector<256x4xf32>
    %47 = tpu.concatenate %6, %11, %16, %21, %26, %31, %36, %41, %46 in 1 : vector<256x4xf32>, vector<256x4xf32>, vector<256x4xf32>, vector<256x4xf32>, vector<256x4xf32>, vector<256x4xf32>, vector<256x4xf32>, vector<256x4xf32>, vector<256x4xf32> -> vector<256x36xf32>
    %c0_30 = arith.constant 0 : index
    %c0_31 = arith.constant 0 : index
    %48 = vector.load %arg4[%c0_30, %c0_31] : memref<36x128xf32, #tpu.memory_space<vmem>>, vector<36x128xf32>
    %cst = arith.constant dense<0.000000e+00> : vector<256x128xf32>
    %49 = tpu.matmul %47, %48, %cst {dimension_numbers = #tpu.dot_dimension_numbers<[1], [0], [0], [1], [0, 0, 1, 1], [], []>} : vector<256x36xf32>, vector<36x128xf32>, vector<256x128xf32> -> vector<256x128xf32>
    %c0_32 = arith.constant 0 : index
    %c0_33 = arith.constant 0 : index
    %50 = vector.load %arg5[%c0_32, %c0_33] : memref<1x128xf32, #tpu.memory_space<vmem>>, vector<1x128xf32>
    %51 = vector.broadcast %50 : vector<1x128xf32> to vector<256x128xf32>
    %52 = arith.addf %49, %51 : vector<256x128xf32>
    %cst_34 = arith.constant 0.000000e+00 : f32
    %53 = vector.broadcast %cst_34 : f32 to vector<256x128xf32>
    %54 = arith.cmpf ogt, %52, %53 : vector<256x128xf32>
    %cst_35 = arith.constant 1.000000e-01 : f32
    %55 = vector.broadcast %cst_35 : f32 to vector<256x128xf32>
    %56 = arith.mulf %55, %52 : vector<256x128xf32>
    %57 = arith.select %54, %52, %56 : vector<256x128xi1>, vector<256x128xf32>
    %c0_36 = arith.constant 0 : index
    %c0_37 = arith.constant 0 : index
    %c0_38 = arith.constant 0 : index
    %58 = vector.load %arg6[%c0_36, %c0_37, %c0_38] : memref<1x256x128xf32, #tpu.memory_space<vmem>>, vector<1x256x128xf32>
    %59 = vector.shape_cast %58 : vector<1x256x128xf32> to vector<256x128xf32>
    %60 = vector.shape_cast %57 : vector<256x128xf32> to vector<1x256x128xf32>
    tpu.vector_store %arg6[%c0_36, %c0_37, %c0_38], %60 {strides = array<i32>} : memref<1x256x128xf32, #tpu.memory_space<vmem>>, vector<1x256x128xf32>,
    return
  }
  func.func @transform_0(%arg0: i32, %arg1: i32, %arg2: i32) -> (i32, i32, i32, i32) {
    %c0_i32 = arith.constant 0 : i32
    %c0_i32_0 = arith.constant 0 : i32
    %c0_i32_1 = arith.constant 0 : i32
    %c0_i32_2 = arith.constant 0 : i32
    return %arg0, %c0_i32, %c0_i32_0, %c0_i32_1 : i32, i32, i32, i32
  }
  func.func @transform_1(%arg0: i32, %arg1: i32, %arg2: i32) -> (i32, i32) {
    %c0_i32 = arith.constant 0 : i32
    %c0_i32_0 = arith.constant 0 : i32
    return %c0_i32, %arg2 : i32, i32
  }
  func.func @transform_2(%arg0: i32, %arg1: i32, %arg2: i32) -> (i32, i32) {
    %c0_i32 = arith.constant 0 : i32
    %c0_i32_0 = arith.constant 0 : i32
    return %c0_i32, %arg2 : i32, i32
  }
  func.func @transform_3(%arg0: i32, %arg1: i32, %arg2: i32) -> (i32, i32, i32) {
    %c0_i32 = arith.constant 0 : i32
    return %arg0, %arg1, %arg2 : i32, i32, i32
  }
}

</mosaic_0001>

<bundles_post_ra>
// kernel: tpu_custom_call.1
= control target key start
LH: loop header
LB: loop body
LE: loop exit
PB: predicated region body
PF: predicated region fallthrough
CT: control target
= control target key end

     0   :  { %8 = vsyncpa [#allocation3], 0  ;;  %s4572_s0 = inlined_call_operand.vmem [shape: f32[2,18,18,4], index: 0, kind: input, shape index: {}]   ;;  %s4573_s1 = inlined_call_operand.vmem [shape: f32[36,128], index: 1, kind: input, shape index: {}]   ;;  %s4574_s2 = inlined_call_operand.vmem [shape: f32[1,128], index: 2, kind: input, shape index: {}]   ;;  %s4575_s3 = inlined_call_operand.hbm [shape: f32[2,256,128], index: 3, kind: output, shape index: {}]  }
   0x1   :  { %10 = vsyncpa [#allocation3 + $0x1], 0  ;;  %s2727_s12 = smov 0   ;;  %s2729_s13 = smov 0  }
   0x2   :  { %s2731_s14 = smov 0   ;;  %s2733_s15 = smov 0  }
   0x3   :  { %s2735_s16 = smov 0   ;;  %s2737_s17 = smov 0  }
   0x4 LB: > { %s2293_s18 = sadd.s32 4294967295, %s2696_s17   ;;  %s2294_s19 = sadd.s32 4294967294, %s2696_s17   ;;  %s2696_s17 = sphi %s2737_s17, %s16_s17   ;;  %s2692_s16 = sphi %s2735_s16, %s4863_s16   ;;  %s2688_s15 = sphi %s2733_s15, %s4862_s15   ;;  %s2684_s14 = sphi %s2731_s14, %s4861_s14   ;;  %s2680_s13 = sphi %s2729_s13, %s4860_s13   ;;  %s2676_s12 = sphi %s2727_s12, %s4859_s12  }
   0x5   : > { %s35_s20 = sadd.s32 1, %s2692_s16  ;;  %s124_s21 = sadd.s32 1, %s2684_s14 }
   0x6   : > { %p37_p0 = scmp.ge.s32.totalorder %s35_s20, 2  ;;  %p134_p1 = scmp.ne.s32.totalorder %s2684_s14, %s2680_s13 }
   0x7   : > { %p135_p2 = scmp.eq.s32.totalorder %s2293_s18, 1  ;;  %p140_p3 = scmp.ne.s32.totalorder %s2680_s13, %s2676_s12 }
   0x8   : > { %s4865_s20 = smov (%p37_p0, %s35_s20), 0  ;;  %p141_p5 = scmp.eq.s32.totalorder %s2294_s19, 1 }
   0x9   : > { %p2767_p4 = por %p135_p2, %p134_p1  ;;  %s117_s23 = ssub.s32 %s2692_s16, %s4865_s20 }
   0xa   : > { %p2299_p6 = scmp.ge.s32.totalorder %s2696_s17, 1  ;;  %p122_p7 = scmp.eq.s32.totalorder %s117_s23, 0 }
   0xb   : > { %p2774_p8 = por %p141_p5, %p140_p3  ;;  %p180_p9 = scmp.lt.s32.totalorder %s2696_s17, 3 }
   0xc   : > { %s2780_s25 = scalar_select %p122_p7, %s2684_s14, %s124_s21  }
   0xd   : > { %p181_p10 = pnand %p2299_p6, %p180_p9 }
   0xf   : > { %184 = sbr.rel (%p181_p10) target bundleno = 960 (0x3c0), region = 32 }
  0x14   : > { %p211_p11 = scmp.lt.s32.totalorder %s2688_s15, 1  ;;  %s2698_s4 = smov 4   ;;  %vm1545_vm0 = vcmask 31744   ;;  %vm1578_vm1 = vcmask 64512   ;;  %vm1611_vm2 = vcmask 97280   ;;  %vm1644_vm3 = vcmask 130048  }
  0x15   : > { %s2699_s5 = smov 8   ;;  %s2700_s6 = smov 12   ;;  %vm1677_vm4 = vcmask 162816   ;;  %vm1710_vm5 = vcmask 195584   ;;  %vm1915_vm6 = vcmask 1043456   ;;  %vm1743_vm7 = vcmask 228352  }
  0x16   : > { %s212_s26 = scalar_select %p211_p11, %s2688_s15, 1  ;;  %vm1776_vm8 = vcmask 261120   ;;  %vm1818_vm9 = vcmask 293888  }
  0x17   : > { %s2701_s7 = smov 16   ;;  %s2702_s8 = smov 20  }
  0x18   : > { %s2548_s27 = smul.u32 432, %s212_s26  ;;  %s2703_s9 = smov 24  }
  0x19   : > { %s2704_s10 = smov 28   ;;  %s2705_s11 = smov 32  }
  0x1a   : > { %s2787_s30 = scalar_lea.vmem %s4572_s0, %s2548_s27 }
  0x1b   : > { %v2790_v0 = vld [vmem:[%s2787_s30 + $0x31] sm:$0xff]  ;;  %v2793_v1 = vld [vmem:[%s2787_s30 + $0x19] sm:$0xff]  ;;  %v259_v2 = vld [vmem:[%s2787_s30 + $0x1] sm:$0xff] }
  0x1c   : > { %561 = vrot.lane.b32.xlu2 %v2790_v0, %s2698_s4  ;;  %557 = vrot.lane.b32.xlu1 %v2793_v1, %s2698_s4  ;;  %v2802_v3 = vld [vmem:[%s2787_s30 + $0x39] sm:$0xff]  ;;  %v2805_v4 = vld [vmem:[%s2787_s30 + $0x21] sm:$0xff] }
  0x1d   : > { %553 = vrot.lane.b32.xlu0 %v259_v2, %s2698_s4  ;;  %v260_v5 = vld [vmem:[%s2787_s30 + $0x9] sm:$0xff]  ;;  %v2814_v6 = vld [vmem:[%s2787_s30 + $0x61] sm:$0xff]  ;;  %v2817_v7 = vld [vmem:[%s2787_s30 + $0x51] sm:$0xff] }
  0x1e   : > { %v2820_v8 = vld [vmem:[%s2787_s30 + $0x49] sm:$0xff]  ;;  %v2829_v9 = vld [vmem:[%s2787_s30 + $0x81] sm:$0xff]  ;;  %v2832_v10 = vld [vmem:[%s2787_s30 + $0x79] sm:$0xff] }
  0x1f   : > { %v2835_v11 = vld [vmem:[%s2787_s30 + $0x69] sm:$0xff]  ;;  %v2847_v13 = vld [vmem:[%s2787_s30 + $0x99] sm:$0xff]  ;;  %v2850_v14 = vld [vmem:[%s2787_s30 + $0x91] sm:$0xff] }
  0x20   : > { %v2844_v12 = vld [vmem:[%s2787_s30 + $0xa9] sm:$0xff]  ;;  %v2862_v16 = vld [vmem:[%s2787_s30 + $0xc1] sm:$0xff]  ;;  %v2865_v17 = vld [vmem:[%s2787_s30 + $0xb1] sm:$0xff] }
  0x21   : > { %v2859_v15 = vld [vmem:[%s2787_s30 + $0xc9] sm:$0xff]  ;;  %v2874_v18 = vld [vmem:[%s2787_s30 + $0xf1] sm:$0xff]  ;;  %v2877_v19 = vld [vmem:[%s2787_s30 + $0xe1] sm:$0xff] }
  0x22   : > { %v2880_v20 = vld [vmem:[%s2787_s30 + $0xd9] sm:$0xff]  ;;  %v2889_v21 = vld [vmem:[%s2787_s30 + $0x111] sm:$0xff]  ;;  %v2892_v22 = vld [vmem:[%s2787_s30 + $0x109] sm:$0xff] }
  0x23   : > { %v2895_v23 = vld [vmem:[%s2787_s30 + $0xf9] sm:$0xff]  ;;  %v2907_v25 = vld [vmem:[%s2787_s30 + $0x129] sm:$0xff]  ;;  %v2910_v26 = vld [vmem:[%s2787_s30 + $0x121] sm:$0xff] }
  0x24   : > { %563 = vrot.lane.b32.xlu2 %v2802_v3, %s2698_s4  ;;  %559 = vrot.lane.b32.xlu1 %v2805_v4, %s2698_s4  ;;  %v2904_v24 = vld [vmem:[%s2787_s30 + $0x139] sm:$0xff]  ;;  %v2922_v28 = vld [vmem:[%s2787_s30 + $0x151] sm:$0xff] }
  0x25   : > { %555 = vrot.lane.b32.xlu0 %v260_v5, %s2698_s4  ;;  %v2919_v27 = vld [vmem:[%s2787_s30 + $0x159] sm:$0xff]  ;;  %v2925_v29 = vld [vmem:[%s2787_s30 + $0x141] sm:$0xff]  ;;  %v2935_v31 = vld [vmem:[%s2787_s30 + $0x171] sm:$0xff] }
  0x26   : > { %v291_v30 = vld [vmem:[%s2787_s30 + $0x2] sm:$0xff]  ;;  %v2949_v34 = vld [vmem:[%s2787_s30 + $0x1a] sm:$0xff]  ;;  %v292_v35 = vld [vmem:[%s2787_s30 + $0xa] sm:$0xff] }
  0x27   : > { %v2938_v32 = vld [vmem:[%s2787_s30 + $0x169] sm:$0xff]  ;;  %v2963_v38 = vld [vmem:[%s2787_s30 + $0x3a] sm:$0xff]  ;;  %v2966_v39 = vld [vmem:[%s2787_s30 + $0x32] sm:$0xff] }
  0x28   : > { %v2946_v33 = vld [vmem:[%s2787_s30 + $0x22] sm:$0xff]  ;;  %v2960_v37 = vld [vmem:[%s2787_s30 + $0x4a] sm:$0xff]  ;;  %v2983_v43 = vld [vmem:[%s2787_s30 + $0x52] sm:$0xff] }
  0x29   : > { %v2977_v41 = vld [vmem:[%s2787_s30 + $0x6a] sm:$0xff]  ;;  %v2980_v42 = vld [vmem:[%s2787_s30 + $0x62] sm:$0xff]  ;;  %v2994_v45 = vld [vmem:[%s2787_s30 + $0x92] sm:$0xff] }
  0x2a   : > { %v2997_v46 = vld [vmem:[%s2787_s30 + $0x82] sm:$0xff]  ;;  %v3000_v47 = vld [vmem:[%s2787_s30 + $0x7a] sm:$0xff]  ;;  %v3015_v51 = vld [vmem:[%s2787_s30 + $0xb2] sm:$0xff] }
  0x2b   : > { %v3018_v52 = vld [vmem:[%s2787_s30 + $0xaa] sm:$0xff]  ;;  %v3021_v53 = vld [vmem:[%s2787_s30 + $0x9a] sm:$0xff]  ;;  %v3042_v59 = vld [vmem:[%s2787_s30 + $0xc2] sm:$0xff] }
  0x2c   : > { %569 = vrot.lane.b32.xlu2 %v2814_v6, %s2698_s4  ;;  %567 = vrot.lane.b32.xlu1 %v2817_v7, %s2698_s4  ;;  %v3036_v57 = vld [vmem:[%s2787_s30 + $0xda] sm:$0xff]  ;;  %v3039_v58 = vld [vmem:[%s2787_s30 + $0xca] sm:$0xff] }
  0x2d   : > { %565 = vrot.lane.b32.xlu0 %v2820_v8, %s2698_s4  ;;  %v3057_v63 = vld [vmem:[%s2787_s30 + $0xfa] sm:$0xff]  ;;  %v3060_v2 = vld [vmem:[%s2787_s30 + $0xf2] sm:$0xff]  ;;  %v3063_v5 = vld [vmem:[%s2787_s30 + $0xe2] sm:$0xff] }
  0x34   : > { %575 = vrot.lane.b32.xlu2 %v2829_v9, %s2698_s4  ;;  %573 = vrot.lane.b32.xlu1 %v2832_v10, %s2698_s4 }
  0x35   : > { %571 = vrot.lane.b32.xlu0 %v2835_v11, %s2698_s4 }
  0x3c   : > { %581 = vrot.lane.b32.xlu2 %v2844_v12, %s2698_s4  ;;  %579 = vrot.lane.b32.xlu1 %v2847_v13, %s2698_s4 }
  0x3d   : > { %577 = vrot.lane.b32.xlu0 %v2850_v14, %s2698_s4 }
  0x44   : > { %587 = vrot.lane.b32.xlu2 %v2859_v15, %s2698_s4  ;;  %585 = vrot.lane.b32.xlu1 %v2862_v16, %s2698_s4 }
  0x45   : > { %583 = vrot.lane.b32.xlu0 %v2865_v17, %s2698_s4 }
  0x4c   : > { %593 = vrot.lane.b32.xlu2 %v2874_v18, %s2698_s4  ;;  %591 = vrot.lane.b32.xlu1 %v2877_v19, %s2698_s4 }
  0x4d   : > { %589 = vrot.lane.b32.xlu0 %v2880_v20, %s2698_s4 }
  0x54   : > { %599 = vrot.lane.b32.xlu2 %v2889_v21, %s2698_s4  ;;  %597 = vrot.lane.b32.xlu1 %v2892_v22, %s2698_s4 }
  0x55   : > { %595 = vrot.lane.b32.xlu0 %v2895_v23, %s2698_s4 }
  0x5c   : > { %605 = vrot.lane.b32.xlu2 %v2904_v24, %s2698_s4  ;;  %603 = vrot.lane.b32.xlu1 %v2907_v25, %s2698_s4 }
  0x5d   : > { %601 = vrot.lane.b32.xlu0 %v2910_v26, %s2698_s4 }
  0x64   : > { %611 = vrot.lane.b32.xlu2 %v2919_v27, %s2698_s4  ;;  %609 = vrot.lane.b32.xlu1 %v2922_v28, %s2698_s4 }
  0x65   : > { %607 = vrot.lane.b32.xlu0 %v2925_v29, %s2698_s4 }
  0x6c   : > { %681 = vrot.lane.b32.xlu2 %v291_v30, %s2699_s5  ;;  %615 = vrot.lane.b32.xlu1 %v2935_v31, %s2698_s4 }
  0x6d   : > { %613 = vrot.lane.b32.xlu0 %v2938_v32, %s2698_s4 }
  0x74   : > { %687 = vrot.lane.b32.xlu2 %v2946_v33, %s2699_s5  ;;  %685 = vrot.lane.b32.xlu1 %v2949_v34, %s2699_s5 }
  0x75   : > { %683 = vrot.lane.b32.xlu0 %v292_v35, %s2699_s5 }
  0x76   : > { %v2957_v36 = vpop.permute.xlu2 %561 }
  0x77   : > { %4626 = vst [vmem:[#allocation5_spill] sm:$0xff] %v2957_v36  ;;  %v3102_v36 = vld [vmem:[%s2787_s30 + $0x13a] sm:$0xff] }
  0x7c   : > { %693 = vrot.lane.b32.xlu2 %v2960_v37, %s2699_s5  ;;  %691 = vrot.lane.b32.xlu1 %v2963_v38, %s2699_s5 }
  0x7d   : > { %689 = vrot.lane.b32.xlu0 %v2966_v39, %s2699_s5 }
  0x7e   : > { %v2974_v40 = vpop.permute.xlu2 %563 }
  0x7f   : > { %4627 = vst [vmem:[#allocation6_spill] sm:$0xff] %v2974_v40  ;;  %v3081_v40 = vld [vmem:[%s2787_s30 + $0x112] sm:$0xff] }
  0x84   : > { %699 = vrot.lane.b32.xlu2 %v2977_v41, %s2699_s5  ;;  %697 = vrot.lane.b32.xlu1 %v2980_v42, %s2699_s5 }
  0x85   : > { %695 = vrot.lane.b32.xlu0 %v2983_v43, %s2699_s5 }
  0x86   : > { %v2991_v44 = vpop.permute.xlu2 %569 }
  0x87   : > { %4628 = vst [vmem:[#allocation7_spill] sm:$0xff] %v2991_v44 }
  0x8c   : > { %705 = vrot.lane.b32.xlu2 %v2994_v45, %s2699_s5  ;;  %703 = vrot.lane.b32.xlu1 %v2997_v46, %s2699_s5 }
  0x8d   : > { %701 = vrot.lane.b32.xlu0 %v3000_v47, %s2699_s5 }
  0x8e   : > { %v3008_v48 = vpop.permute.xlu2 %575  ;;  %v3010_v49 = vpop.permute.xlu1 %557 }
  0x8f   : > { %4629 = vst [vmem:[#allocation8_spill] sm:$0xff] %v3008_v48  ;;  %v3012_v50 = vpop.permute.xlu0 %553  ;;  %v3078_v48 = vld [vmem:[%s2787_s30 + $0x122] sm:$0xff] }
  0x90   : > { %4630 = vst [vmem:[#allocation9_spill] sm:$0xff] %v3010_v49  ;;  %v3141_v49 = vld [vmem:[%s2787_s30 + $0x172] sm:$0xff] }
  0x91   : > { %4631 = vst [vmem:[#allocation10_spill] sm:$0xff] %v3012_v50 }
  0x92   : > { %4654 = vst [vmem:[#allocation33_spill] sm:$0xff] %v3141_v49 }
  0x94   : > { %711 = vrot.lane.b32.xlu2 %v3015_v51, %s2699_s5  ;;  %709 = vrot.lane.b32.xlu1 %v3018_v52, %s2699_s5 }
  0x95   : > { %707 = vrot.lane.b32.xlu0 %v3021_v53, %s2699_s5 }
  0x96   : > { %v3029_v54 = vpop.permute.xlu2 %581  ;;  %v3031_v55 = vpop.permute.xlu1 %559 }
  0x97   : > { %4632 = vst [vmem:[#allocation11_spill] sm:$0xff] %v3029_v54  ;;  %v3033_v56 = vpop.permute.xlu0 %555  ;;  %v3126_v54 = vld [vmem:[%s2787_s30 + $0x152] sm:$0xff] }
  0x98   : > { %4633 = vst [vmem:[#allocation12_spill] sm:$0xff] %v3031_v55  ;;  %v3144_v55 = vld [vmem:[%s2787_s30 + $0x18] sm:$0xff] }
  0x99   : > { %4634 = vst [vmem:[#allocation13_spill] sm:$0xff] %v3033_v56  ;;  %v3105_v56 = vld [vmem:[%s2787_s30 + $0x12a] sm:$0xff] }
  0x9a   : > { %4650 = vst [vmem:[#allocation29_spill] sm:$0xff] %v3126_v54 }
  0x9b   : > { %4655 = vst [vmem:[#allocation34_spill] sm:$0xff] %v3144_v55 }
  0x9c   : > { %717 = vrot.lane.b32.xlu2 %v3036_v57, %s2699_s5  ;;  %715 = vrot.lane.b32.xlu1 %v3039_v58, %s2699_s5 }
  0x9d   : > { %713 = vrot.lane.b32.xlu0 %v3042_v59, %s2699_s5 }
  0x9e   : > { %v3050_v60 = vpop.permute.xlu2 %587  ;;  %v3052_v61 = vpop.permute.xlu1 %567 }
  0x9f   : > { %4635 = vst [vmem:[#allocation14_spill] sm:$0xff] %v3050_v60  ;;  %v3054_v62 = vpop.permute.xlu0 %565  ;;  %v3120_v60 = vld [vmem:[%s2787_s30 + $0x16a] sm:$0xff] }
  0xa0   : > { %4636 = vst [vmem:[#allocation15_spill] sm:$0xff] %v3052_v61  ;;  %v3099_v61 = vld [vmem:[%s2787_s30 + $0x142] sm:$0xff] }
  0xa1   : > { %4637 = vst [vmem:[#allocation16_spill] sm:$0xff] %v3054_v62  ;;  %v3084_v62 = vld [vmem:[%s2787_s30 + $0x10a] sm:$0xff] }
  0xa2   : > { %4644 = vst [vmem:[#allocation23_spill] sm:$0xff] %v3099_v61 }
  0xa3   : > { %4648 = vst [vmem:[#allocation27_spill] sm:$0xff] %v3120_v60 }
  0xa4   : > { %723 = vrot.lane.b32.xlu2 %v3057_v63, %s2699_s5  ;;  %721 = vrot.lane.b32.xlu1 %v3060_v2, %s2699_s5 }
  0xa5   : > { %719 = vrot.lane.b32.xlu0 %v3063_v5, %s2699_s5 }
  0xa6   : > { %v3071_v30 = vpop.permute.xlu2 %593  ;;  %v3073_v35 = vpop.permute.xlu1 %573 }
  0xa7   : > { %4638 = vst [vmem:[#allocation17_spill] sm:$0xff] %v3071_v30  ;;  %v3075_v44 = vpop.permute.xlu0 %571 }
  0xa8   : > { %4639 = vst [vmem:[#allocation18_spill] sm:$0xff] %v3073_v35 }
  0xa9   : > { %4640 = vst [vmem:[#allocation19_spill] sm:$0xff] %v3075_v44 }
  0xac   : > { %729 = vrot.lane.b32.xlu2 %v3078_v48, %s2699_s5  ;;  %727 = vrot.lane.b32.xlu1 %v3081_v40, %s2699_s5 }
  0xad   : > { %725 = vrot.lane.b32.xlu0 %v3084_v62, %s2699_s5 }
  0xae   : > { %v3092_v35 = vpop.permute.xlu2 %599  ;;  %v3094_v44 = vpop.permute.xlu1 %579 }
  0xaf   : > { %4641 = vst [vmem:[#allocation20_spill] sm:$0xff] %v3092_v35  ;;  %v3096_v50 = vpop.permute.xlu0 %577 }
  0xb0   : > { %4642 = vst [vmem:[#allocation21_spill] sm:$0xff] %v3094_v44  ;;  %v3123_v44 = vld [vmem:[%s2787_s30 + $0x15a] sm:$0xff] }
  0xb1   : > { %4643 = vst [vmem:[#allocation22_spill] sm:$0xff] %v3096_v50 }
  0xb2   : > { %4649 = vst [vmem:[#allocation28_spill] sm:$0xff] %v3123_v44 }
  0xb4   : > { %735 = vrot.lane.b32.xlu2 %v3099_v61, %s2699_s5  ;;  %733 = vrot.lane.b32.xlu1 %v3102_v36, %s2699_s5  ;;  %v3162_v61 = vld [vmem:[%s2787_s30 + $0x38] sm:$0xff] }
  0xb5   : > { %731 = vrot.lane.b32.xlu0 %v3105_v56, %s2699_s5  ;;  %4660 = vst [vmem:[#allocation39_spill] sm:$0xff] %v3162_v61 }
  0xb6   : > { %v3113_v35 = vpop.permute.xlu2 %605  ;;  %v3115_v50 = vpop.permute.xlu1 %585 }
  0xb7   : > { %4645 = vst [vmem:[#allocation24_spill] sm:$0xff] %v3113_v35  ;;  %v3117_v30 = vpop.permute.xlu0 %583 }
  0xb8   : > { %4646 = vst [vmem:[#allocation25_spill] sm:$0xff] %v3115_v50 }
  0xb9   : > { %4647 = vst [vmem:[#allocation26_spill] sm:$0xff] %v3117_v30 }
  0xbc   : > { %741 = vrot.lane.b32.xlu2 %v3120_v60, %s2699_s5  ;;  %739 = vrot.lane.b32.xlu1 %v3123_v44, %s2699_s5  ;;  %v3147_v60 = vld [vmem:[%s2787_s30 + $0x20] sm:$0xff]  ;;  %v3168_v44 = vld [vmem:[%s2787_s30 + $0x30] sm:$0xff] }
  0xbd   : > { %737 = vrot.lane.b32.xlu0 %v3126_v54, %s2699_s5  ;;  %4656 = vst [vmem:[#allocation35_spill] sm:$0xff] %v3147_v60  ;;  %v3165_v54 = vld [vmem:[%s2787_s30 + $0x48] sm:$0xff] }
  0xbe   : > { %v3134_v35 = vpop.permute.xlu2 %611  ;;  %v3136_v50 = vpop.permute.xlu1 %591  ;;  %4661 = vst [vmem:[#allocation40_spill] sm:$0xff] %v3165_v54 }
  0xbf   : > { %4651 = vst [vmem:[#allocation30_spill] sm:$0xff] %v3134_v35  ;;  %v3138_v30 = vpop.permute.xlu0 %589 }
  0xc0   : > { %4652 = vst [vmem:[#allocation31_spill] sm:$0xff] %v3136_v50 }
  0xc1   : > { %4653 = vst [vmem:[#allocation32_spill] sm:$0xff] %v3138_v30 }
  0xc2   : > { %4662 = vst [vmem:[#allocation41_spill] sm:$0xff] %v3168_v44 }
  0xc4   : > { %811 = vrot.lane.b32.xlu2 %v3147_v60, %s2700_s6  ;;  %809 = vrot.lane.b32.xlu1 %v3144_v55, %s2700_s6  ;;  %v235_v60 = vld [vmem:[%s2787_s30 + $0x60] sm:$0xff] }
  0xc5   : > { %743 = vrot.lane.b32.xlu0 %v3141_v49, %s2699_s5  ;;  %v3187_v49 = vld [vmem:[%s2787_s30 + $0x50] sm:$0xff] }
  0xc6   : > { %v3155_v35 = vpop.permute.xlu2 %681  ;;  %v3157_v50 = vpop.permute.xlu1 %597  ;;  %4667 = vst [vmem:[#allocation46_spill] sm:$0xff] %v3187_v49 }
  0xc7   : > { %4657 = vst [vmem:[#allocation36_spill] sm:$0xff] %v3155_v35  ;;  %v3159_v30 = vpop.permute.xlu0 %595 }
  0xc8   : > { %4658 = vst [vmem:[#allocation37_spill] sm:$0xff] %v3157_v50  ;;  %v3184_v50 = vld [vmem:[%s2787_s30 + $0x68] sm:$0xff] }
  0xc9   : > { %4659 = vst [vmem:[#allocation38_spill] sm:$0xff] %v3159_v30 }
  0xca   : > { %4666 = vst [vmem:[#allocation45_spill] sm:$0xff] %v3184_v50 }
  0xcc   : > { %817 = vrot.lane.b32.xlu2 %v3165_v54, %s2700_s6  ;;  %815 = vrot.lane.b32.xlu1 %v3162_v61, %s2700_s6 }
  0xcd   : > { %813 = vrot.lane.b32.xlu0 %v3168_v44, %s2700_s6 }
  0xce   : > { %v3176_v35 = vpop.permute.xlu2 %687  ;;  %v3178_v30 = vpop.permute.xlu1 %603 }
  0xcf   : > { %4663 = vst [vmem:[#allocation42_spill] sm:$0xff] %v3176_v35  ;;  %v3180_v55 = vpop.permute.xlu0 %601  ;;  %v3205_v35 = vld [vmem:[%s2787_s30 + $0x78] sm:$0xff] }
  0xd0   : > { %4664 = vst [vmem:[#allocation43_spill] sm:$0xff] %v3178_v30  ;;  %v3202_v30 = vld [vmem:[%s2787_s30 + $0x90] sm:$0xff] }
  0xd1   : > { %4665 = vst [vmem:[#allocation44_spill] sm:$0xff] %v3180_v55  ;;  %v238_v55 = vld [vmem:[%s2787_s30 + $0x80] sm:$0xff] }
  0xd2   : > { %4671 = vst [vmem:[#allocation50_spill] sm:$0xff] %v3202_v30 }
  0xd3   : > { %4672 = vst [vmem:[#allocation51_spill] sm:$0xff] %v3205_v35 }
  0xd4   : > { %823 = vrot.lane.b32.xlu2 %v3184_v50, %s2700_s6  ;;  %821 = vrot.lane.b32.xlu1 %v235_v60, %s2700_s6  ;;  %v3219_v50 = vld [vmem:[%s2787_s30 + $0xa8] sm:$0xff] }
  0xd5   : > { %819 = vrot.lane.b32.xlu0 %v3187_v49, %s2700_s6  ;;  %4676 = vst [vmem:[#allocation55_spill] sm:$0xff] %v3219_v50  ;;  %v3225_v49 = vld [vmem:[%s2787_s30 + $0x98] sm:$0xff] }
  0xd6   : > { %v3194_v61 = vpop.permute.xlu2 %693  ;;  %v3196_v44 = vpop.permute.xlu1 %609  ;;  %4678 = vst [vmem:[#allocation57_spill] sm:$0xff] %v3225_v49 }
  0xd7   : > { %4668 = vst [vmem:[#allocation47_spill] sm:$0xff] %v3194_v61  ;;  %v3198_v54 = vpop.permute.xlu0 %607 }
  0xd8   : > { %4669 = vst [vmem:[#allocation48_spill] sm:$0xff] %v3196_v44 }
  0xd9   : > { %4670 = vst [vmem:[#allocation49_spill] sm:$0xff] %v3198_v54  ;;  %v3222_v54 = vld [vmem:[%s2787_s30 + $0xb0] sm:$0xff] }
  0xda   : > { %4677 = vst [vmem:[#allocation56_spill] sm:$0xff] %v3222_v54 }
  0xdc   : > { %829 = vrot.lane.b32.xlu2 %v3202_v30, %s2700_s6  ;;  %827 = vrot.lane.b32.xlu1 %v238_v55, %s2700_s6  ;;  %v3240_v30 = vld [vmem:[%s2787_s30 + $0xc8] sm:$0xff] }
  0xdd   : > { %825 = vrot.lane.b32.xlu0 %v3205_v35, %s2700_s6  ;;  %4682 = vst [vmem:[#allocation61_spill] sm:$0xff] %v3240_v30  ;;  %v3246_v35 = vld [vmem:[%s2787_s30 + $0xc0] sm:$0xff] }
  0xde   : > { %v3212_v60 = vpop.permute.xlu2 %699  ;;  %v3214_v61 = vpop.permute.xlu1 %615  ;;  %4684 = vst [vmem:[#allocation63_spill] sm:$0xff] %v3246_v35 }
  0xdf   : > { %4673 = vst [vmem:[#allocation52_spill] sm:$0xff] %v3212_v60  ;;  %v3216_v44 = vpop.permute.xlu0 %613 }
  0xe0   : > { %4674 = vst [vmem:[#allocation53_spill] sm:$0xff] %v3214_v61  ;;  %v3243_v61 = vld [vmem:[%s2787_s30 + $0xd8] sm:$0xff] }
  0xe1   : > { %4675 = vst [vmem:[#allocation54_spill] sm:$0xff] %v3216_v44 }
  0xe2   : > { %4683 = vst [vmem:[#allocation62_spill] sm:$0xff] %v3243_v61 }
  0xe4   : > { %835 = vrot.lane.b32.xlu2 %v3222_v54, %s2700_s6  ;;  %833 = vrot.lane.b32.xlu1 %v3219_v50, %s2700_s6  ;;  %v3261_v54 = vld [vmem:[%s2787_s30 + $0xf0] sm:$0xff] }
  0xe5   : > { %831 = vrot.lane.b32.xlu0 %v3225_v49, %s2700_s6  ;;  %4688 = vst [vmem:[#allocation67_spill] sm:$0xff] %v3261_v54  ;;  %v3267_v49 = vld [vmem:[%s2787_s30 + $0xe0] sm:$0xff] }
  0xe6   : > { %v3233_v55 = vpop.permute.xlu2 %705  ;;  %v3235_v60 = vpop.permute.xlu1 %685  ;;  %4690 = vst [vmem:[#allocation69_spill] sm:$0xff] %v3267_v49 }
  0xe7   : > { %4679 = vst [vmem:[#allocation58_spill] sm:$0xff] %v3233_v55  ;;  %v3237_v44 = vpop.permute.xlu0 %683 }
  0xe8   : > { %4680 = vst [vmem:[#allocation59_spill] sm:$0xff] %v3235_v60  ;;  %v3264_v60 = vld [vmem:[%s2787_s30 + $0xf8] sm:$0xff] }
  0xe9   : > { %4681 = vst [vmem:[#allocation60_spill] sm:$0xff] %v3237_v44 }
  0xea   : > { %4689 = vst [vmem:[#allocation68_spill] sm:$0xff] %v3264_v60 }
  0xec   : > { %841 = vrot.lane.b32.xlu2 %v3243_v61, %s2700_s6  ;;  %839 = vrot.lane.b32.xlu1 %v3240_v30, %s2700_s6  ;;  %v3282_v61 = vld [vmem:[%s2787_s30 + $0x110] sm:$0xff] }
  0xed   : > { %837 = vrot.lane.b32.xlu0 %v3246_v35, %s2700_s6  ;;  %4694 = vst [vmem:[#allocation73_spill] sm:$0xff] %v3282_v61  ;;  %v3288_v35 = vld [vmem:[%s2787_s30 + $0x108] sm:$0xff] }
  0xee   : > { %v3254_v55 = vpop.permute.xlu2 %711  ;;  %v3256_v44 = vpop.permute.xlu1 %691  ;;  %4696 = vst [vmem:[#allocation75_spill] sm:$0xff] %v3288_v35 }
  0xef   : > { %4685 = vst [vmem:[#allocation64_spill] sm:$0xff] %v3254_v55  ;;  %v3258_v50 = vpop.permute.xlu0 %689  ;;  %v3285_v55 = vld [vmem:[%s2787_s30 + $0x120] sm:$0xff] }
  0xf0   : > { %4686 = vst [vmem:[#allocation65_spill] sm:$0xff] %v3256_v44 }
  0xf1   : > { %4687 = vst [vmem:[#allocation66_spill] sm:$0xff] %v3258_v50 }
  0xf2   : > { %4695 = vst [vmem:[#allocation74_spill] sm:$0xff] %v3285_v55 }
  0xf4   : > { %847 = vrot.lane.b32.xlu2 %v3264_v60, %s2700_s6  ;;  %845 = vrot.lane.b32.xlu1 %v3261_v54, %s2700_s6  ;;  %v3303_v60 = vld [vmem:[%s2787_s30 + $0x138] sm:$0xff] }
  0xf5   : > { %843 = vrot.lane.b32.xlu0 %v3267_v49, %s2700_s6  ;;  %4700 = vst [vmem:[#allocation79_spill] sm:$0xff] %v3303_v60  ;;  %v3309_v49 = vld [vmem:[%s2787_s30 + $0x128] sm:$0xff] }
  0xf6   : > { %v3275_v44 = vpop.permute.xlu2 %717  ;;  %v3277_v50 = vpop.permute.xlu1 %697  ;;  %4702 = vst [vmem:[#allocation81_spill] sm:$0xff] %v3309_v49 }
  0xf7   : > { %4691 = vst [vmem:[#allocation70_spill] sm:$0xff] %v3275_v44  ;;  %v3279_v30 = vpop.permute.xlu0 %695  ;;  %v3306_v44 = vld [vmem:[%s2787_s30 + $0x140] sm:$0xff] }
  0xf8   : > { %4692 = vst [vmem:[#allocation71_spill] sm:$0xff] %v3277_v50 }
  0xf9   : > { %4693 = vst [vmem:[#allocation72_spill] sm:$0xff] %v3279_v30 }
  0xfa   : > { %4701 = vst [vmem:[#allocation80_spill] sm:$0xff] %v3306_v44 }
  0xfc   : > { %853 = vrot.lane.b32.xlu2 %v3285_v55, %s2700_s6  ;;  %851 = vrot.lane.b32.xlu1 %v3282_v61, %s2700_s6  ;;  %v3327_v55 = vld [vmem:[%s2787_s30 + $0x168] sm:$0xff] }
  0xfd   : > { %849 = vrot.lane.b32.xlu0 %v3288_v35, %s2700_s6  ;;  %4707 = vst [vmem:[#allocation86_spill] sm:$0xff] %v3327_v55  ;;  %v3330_v35 = vld [vmem:[%s2787_s30 + $0x150] sm:$0xff] }
  0xfe   : > { %v3296_v50 = vpop.permute.xlu2 %723  ;;  %v3298_v30 = vpop.permute.xlu1 %703 }
  0xff   : > { %4697 = vst [vmem:[#allocation76_spill] sm:$0xff] %v3296_v50  ;;  %v3300_v54 = vpop.permute.xlu0 %701  ;;  %v3324_v50 = vld [vmem:[%s2787_s30 + $0x158] sm:$0xff] }
 0x100   : > { %4698 = vst [vmem:[#allocation77_spill] sm:$0xff] %v3298_v30 }
 0x101   : > { %4699 = vst [vmem:[#allocation78_spill] sm:$0xff] %v3300_v54 }
 0x102   : > { %4706 = vst [vmem:[#allocation85_spill] sm:$0xff] %v3324_v50 }
 0x104   : > { %859 = vrot.lane.b32.xlu2 %v3306_v44, %s2700_s6  ;;  %857 = vrot.lane.b32.xlu1 %v3303_v60, %s2700_s6  ;;  %v2333_v44 = vld [vmem:[%s2787_s30 + $0x188] sm:$0xff] }
 0x105   : > { %855 = vrot.lane.b32.xlu0 %v3309_v49, %s2700_s6  ;;  %v3349_v49 = vld [vmem:[%s2787_s30 + $0x170] sm:$0xff] }
 0x106   : > { %v3317_v30 = vpop.permute.xlu2 %729  ;;  %v3319_v54 = vpop.permute.xlu1 %709 }
 0x107   : > { %4703 = vst [vmem:[#allocation82_spill] sm:$0xff] %v3317_v30  ;;  %v3321_v61 = vpop.permute.xlu0 %707  ;;  %v3346_v30 = vld [vmem:[%s2787_s30 + $0x180] sm:$0xff] }
 0x108   : > { %4704 = vst [vmem:[#allocation83_spill] sm:$0xff] %v3319_v54 }
 0x109   : > { %4705 = vst [vmem:[#allocation84_spill] sm:$0xff] %v3321_v61 }
 0x10a   : > { %4710 = vst [vmem:[#allocation89_spill] sm:$0xff] %v3346_v30 }
 0x10c   : > { %865 = vrot.lane.b32.xlu2 %v3327_v55, %s2700_s6  ;;  %863 = vrot.lane.b32.xlu1 %v3324_v50, %s2700_s6 }
 0x10d   : > { %861 = vrot.lane.b32.xlu0 %v3330_v35, %s2700_s6 }
 0x10e   : > { %v3338_v60 = vpop.permute.xlu2 %735  ;;  %v3340_v54 = vpop.permute.xlu1 %715 }
 0x10f   : > { %4708 = vst [vmem:[#allocation87_spill] sm:$0xff] %v3340_v54  ;;  %v3342_v61 = vpop.permute.xlu0 %713 }
 0x110   : > { %4709 = vst [vmem:[#allocation88_spill] sm:$0xff] %v3342_v61 }
 0x114   : > { %871 = vrot.lane.b32.xlu2 %v2333_v44, %s2700_s6  ;;  %869 = vrot.lane.b32.xlu1 %v3346_v30, %s2700_s6 }
 0x115   : > { %867 = vrot.lane.b32.xlu0 %v3349_v49, %s2700_s6  ;;  %s2638_s6 = scalar_lea.hbm %s4575_s3, 512 }
 0x116   : > { %v3356_v55 = vpop.permute.xlu2 %741  ;;  %v3358_v50 = vpop.permute.xlu1 %721 }
 0x117   : > { %v3360_v54 = vpop.permute.xlu0 %719 }
 0x11c   : > { %941 = vrot.lane.b32.xlu2 %v2790_v0, %s2701_s7  ;;  %939 = vrot.lane.b32.xlu1 %v2805_v4, %s2701_s7 }
 0x11d   : > { %937 = vrot.lane.b32.xlu0 %v2793_v1, %s2701_s7 }
 0x11e   : > { %v3368_v44 = vpop.permute.xlu2 %811  ;;  %v3370_v30 = vpop.permute.xlu1 %727 }
 0x11f   : > { %v3372_v61 = vpop.permute.xlu0 %725 }
 0x124   : > { %947 = vrot.lane.b32.xlu2 %v2817_v7, %s2701_s7  ;;  %945 = vrot.lane.b32.xlu1 %v2820_v8, %s2701_s7 }
 0x125   : > { %943 = vrot.lane.b32.xlu0 %v2802_v3, %s2701_s7 }
 0x126   : > { %v3380_v0 = vpop.permute.xlu2 %817  ;;  %v3382_v4 = vpop.permute.xlu1 %733 }
 0x127   : > { %v3384_v1 = vpop.permute.xlu0 %731 }
 0x12c   : > { %953 = vrot.lane.b32.xlu2 %v2832_v10, %s2701_s7  ;;  %951 = vrot.lane.b32.xlu1 %v2835_v11, %s2701_s7 }
 0x12d   : > { %949 = vrot.lane.b32.xlu0 %v2814_v6, %s2701_s7 }
 0x12e   : > { %v3392_v7 = vpop.permute.xlu2 %823  ;;  %v3394_v8 = vpop.permute.xlu1 %739 }
 0x12f   : > { %v3396_v3 = vpop.permute.xlu0 %737 }
 0x134   : > { %959 = vrot.lane.b32.xlu2 %v2847_v13, %s2701_s7  ;;  %957 = vrot.lane.b32.xlu1 %v2850_v14, %s2701_s7 }
 0x135   : > { %955 = vrot.lane.b32.xlu0 %v2829_v9, %s2701_s7 }
 0x136   : > { %v3404_v10 = vpop.permute.xlu2 %829  ;;  %v3406_v11 = vpop.permute.xlu1 %809 }
 0x137   : > { %4711 = vst [vmem:[#allocation90_spill] sm:$0xff] %v3404_v10  ;;  %v3408_v6 = vpop.permute.xlu0 %743 }
 0x138   : > { %4712 = vst [vmem:[#allocation91_spill] sm:$0xff] %v3406_v11 }
 0x13c   : > { %965 = vrot.lane.b32.xlu2 %v2862_v16, %s2701_s7  ;;  %963 = vrot.lane.b32.xlu1 %v2865_v17, %s2701_s7 }
 0x13d   : > { %961 = vrot.lane.b32.xlu0 %v2844_v12, %s2701_s7 }
 0x13e   : > { %v3416_v13 = vpop.permute.xlu2 %835  ;;  %v3418_v14 = vpop.permute.xlu1 %815 }
 0x13f   : > { %v3420_v9 = vpop.permute.xlu0 %813 }
 0x144   : > { %971 = vrot.lane.b32.xlu2 %v2877_v19, %s2701_s7  ;;  %969 = vrot.lane.b32.xlu1 %v2880_v20, %s2701_s7 }
 0x145   : > { %967 = vrot.lane.b32.xlu0 %v2859_v15, %s2701_s7 }
 0x146   : > { %v3428_v16 = vpop.permute.xlu2 %841  ;;  %v3430_v17 = vpop.permute.xlu1 %821 }
 0x147   : > { %4713 = vst [vmem:[#allocation92_spill] sm:$0xff] %v3430_v17  ;;  %v3432_v12 = vpop.permute.xlu0 %819  ;;  %v3626_v17 = vld [vmem:[%s2787_s30 + $0x18a] sm:$0xff] }
 0x148   : > { %4714 = vst [vmem:[#allocation93_spill] sm:$0xff] %v3432_v12  ;;  %v2398_v12 = vld [vmem:[%s2787_s30 + $0x30] sm:$0xff] }
 0x14c   : > { %977 = vrot.lane.b32.xlu2 %v2892_v22, %s2701_s7  ;;  %975 = vrot.lane.b32.xlu1 %v2895_v23, %s2701_s7 }
 0x14d   : > { %973 = vrot.lane.b32.xlu0 %v2874_v18, %s2701_s7 }
 0x14e   : > { %v3440_v19 = vpop.permute.xlu2 %847  ;;  %v3442_v20 = vpop.permute.xlu1 %827 }
 0x14f   : > { %4715 = vst [vmem:[#allocation94_spill] sm:$0xff] %v3442_v20  ;;  %v3444_v15 = vpop.permute.xlu0 %825  ;;  %v3483_v20 = vld [vmem:[%s2787_s30 + $0x189] sm:$0xff] }
 0x150   : > { %4716 = vst [vmem:[#allocation95_spill] sm:$0xff] %v3444_v15  ;;  %v3486_v15 = vld [vmem:[%s2787_s30 + $0x181] sm:$0xff] }
 0x151   : > { %4720 = vst [vmem:[#allocation99_spill] sm:$0xff] %v3483_v20 }
 0x152   : > { %4721 = vst [vmem:[#allocation100_spill] sm:$0xff] %v3486_v15 }
 0x154   : > { %983 = vrot.lane.b32.xlu2 %v2907_v25, %s2701_s7  ;;  %981 = vrot.lane.b32.xlu1 %v2910_v26, %s2701_s7 }
 0x155   : > { %979 = vrot.lane.b32.xlu0 %v2889_v21, %s2701_s7 }
 0x156   : > { %v3452_v22 = vpop.permute.xlu2 %853  ;;  %v3454_v18 = vpop.permute.xlu1 %833 }
 0x157   : > { %4717 = vst [vmem:[#allocation96_spill] sm:$0xff] %v3454_v18  ;;  %v3456_v23 = vpop.permute.xlu0 %831 }
 0x158   : > { %4718 = vst [vmem:[#allocation97_spill] sm:$0xff] %v3456_v23  ;;  %v3609_v23 = vld [vmem:[%s2787_s30 + $0x182] sm:$0xff] }
 0x15c   : > { %989 = vrot.lane.b32.xlu2 %v2922_v28, %s2701_s7  ;;  %987 = vrot.lane.b32.xlu1 %v2925_v29, %s2701_s7 }
 0x15d   : > { %985 = vrot.lane.b32.xlu0 %v2904_v24, %s2701_s7 }
 0x15e   : > { %v3464_v25 = vpop.permute.xlu2 %859  ;;  %v3466_v21 = vpop.permute.xlu1 %839 }
 0x15f   : > { %v3468_v26 = vpop.permute.xlu0 %837 }
 0x164   : > { %995 = vrot.lane.b32.xlu2 %v2935_v31, %s2701_s7  ;;  %993 = vrot.lane.b32.xlu1 %v2938_v32, %s2701_s7 }
 0x165   : > { %991 = vrot.lane.b32.xlu0 %v2919_v27, %s2701_s7 }
 0x166   : > { %v3476_v28 = vpop.permute.xlu2 %865  ;;  %v3478_v29 = vpop.permute.xlu1 %845 }
 0x167   : > { %4719 = vst [vmem:[#allocation98_spill] sm:$0xff] %v3476_v28  ;;  %v3480_v24 = vpop.permute.xlu0 %843  ;;  %v4745_v28 = vld [vmem:[#allocation43_spill] sm:$0xff] }
 0x16c   : > { %1065 = vrot.lane.b32.xlu2 %v2949_v34, %s2702_s8  ;;  %999 = vrot.lane.b32.xlu1 %v3483_v20, %s2701_s7 }
 0x16d   : > { %997 = vrot.lane.b32.xlu0 %v3486_v15, %s2701_s7 }
 0x16e   : > { %v3494_v27 = vpop.permute.xlu2 %871  ;;  %v3496_v31 = vpop.permute.xlu1 %851 }
 0x16f   : > { %v3498_v32 = vpop.permute.xlu0 %849 }
 0x174   : > { %1071 = vrot.lane.b32.xlu2 %v2963_v38, %s2702_s8  ;;  %1069 = vrot.lane.b32.xlu1 %v2966_v39, %s2702_s8 }
 0x175   : > { %1067 = vrot.lane.b32.xlu0 %v2946_v33, %s2702_s8 }
 0x176   : > { %v3506_v34 = vpop.permute.xlu2 %941  ;;  %v3508_v20 = vpop.permute.xlu1 %857 }
 0x177   : > { %v3510_v15 = vpop.permute.xlu0 %855 }
 0x17c   : > { %1077 = vrot.lane.b32.xlu2 %v2980_v42, %s2702_s8  ;;  %1075 = vrot.lane.b32.xlu1 %v2983_v43, %s2702_s8 }
 0x17d   : > { %1073 = vrot.lane.b32.xlu0 %v2960_v37, %s2702_s8 }
 0x17e   : > { %v3518_v38 = vpop.permute.xlu2 %947  ;;  %v3520_v39 = vpop.permute.xlu1 %863 }
 0x17f   : > { %4722 = vst [vmem:[#allocation101_spill] sm:$0xff] %v3518_v38  ;;  %v3522_v33 = vpop.permute.xlu0 %861 }
 0x184   : > { %1083 = vrot.lane.b32.xlu2 %v2997_v46, %s2702_s8  ;;  %1081 = vrot.lane.b32.xlu1 %v3000_v47, %s2702_s8 }
 0x185   : > { %1079 = vrot.lane.b32.xlu0 %v2977_v41, %s2702_s8 }
 0x186   : > { %v3530_v42 = vpop.permute.xlu2 %953  ;;  %v3532_v43 = vpop.permute.xlu1 %869 }
 0x187   : > { %4723 = vst [vmem:[#allocation102_spill] sm:$0xff] %v3530_v42  ;;  %v3534_v37 = vpop.permute.xlu0 %867  ;;  %v4731_v42 = vld [vmem:[#allocation28_spill] sm:$0xff] }
 0x188   : > { %4734 = vst [vmem:[#allocation28_spill] sm:$0xff] %v3609_v23 }
 0x18c   : > { %1089 = vrot.lane.b32.xlu2 %v3018_v52, %s2702_s8  ;;  %1087 = vrot.lane.b32.xlu1 %v3021_v53, %s2702_s8 }
 0x18d   : > { %1085 = vrot.lane.b32.xlu0 %v2994_v45, %s2702_s8 }
 0x18e   : > { %v3542_v46 = vpop.permute.xlu2 %959  ;;  %v3544_v47 = vpop.permute.xlu1 %939 }
 0x18f   : > { %4724 = vst [vmem:[#allocation103_spill] sm:$0xff] %v3542_v46  ;;  %v3546_v41 = vpop.permute.xlu0 %937 }
 0x190   : > { %4725 = vst [vmem:[#allocation104_spill] sm:$0xff] %v3546_v41 }
 0x194   : > { %1095 = vrot.lane.b32.xlu2 %v3039_v58, %s2702_s8  ;;  %1093 = vrot.lane.b32.xlu1 %v3042_v59, %s2702_s8 }
 0x195   : > { %1091 = vrot.lane.b32.xlu0 %v3015_v51, %s2702_s8 }
 0x196   : > { %v3554_v52 = vpop.permute.xlu2 %965  ;;  %v3556_v53 = vpop.permute.xlu1 %945 }
 0x197   : > { %v3558_v45 = vpop.permute.xlu0 %943 }
 0x19c   : > { %1101 = vrot.lane.b32.xlu2 %v3060_v2, %s2702_s8  ;;  %1099 = vrot.lane.b32.xlu1 %v3063_v5, %s2702_s8 }
 0x19d   : > { %1097 = vrot.lane.b32.xlu0 %v3036_v57, %s2702_s8 }
 0x19e   : > { %v3566_v58 = vpop.permute.xlu2 %971  ;;  %v3568_v59 = vpop.permute.xlu1 %951 }
 0x19f   : > { %4726 = vst [vmem:[#allocation105_spill] sm:$0xff] %v3568_v59  ;;  %v3570_v51 = vpop.permute.xlu0 %949  ;;  %v4746_v59 = vld [vmem:[#allocation81_spill] sm:$0xff] }
 0x1a0   : > { %4727 = vst [vmem:[#allocation106_spill] sm:$0xff] %v3570_v51  ;;  %v2399_v51 = vld [vmem:[%s2787_s30 + $0x38] sm:$0xff] }
 0x1a4   : > { %1107 = vrot.lane.b32.xlu2 %v3081_v40, %s2702_s8  ;;  %1105 = vrot.lane.b32.xlu1 %v3084_v62, %s2702_s8 }
 0x1a5   : > { %1103 = vrot.lane.b32.xlu0 %v3057_v63, %s2702_s8 }
 0x1a6   : > { %v3578_v2 = vpop.permute.xlu2 %977  ;;  %v3580_v5 = vpop.permute.xlu1 %957 }
 0x1a7   : > { %4728 = vst [vmem:[#allocation107_spill] sm:$0xff] %v3580_v5  ;;  %v3582_v57 = vpop.permute.xlu0 %955  ;;  %v4740_v5 = vld [vmem:[#allocation75_spill] sm:$0xff] }
 0x1a8   : > { %4729 = vst [vmem:[#allocation108_spill] sm:$0xff] %v3582_v57 }
 0x1ac   : > { %1113 = vrot.lane.b32.xlu2 %v3102_v36, %s2702_s8  ;;  %1111 = vrot.lane.b32.xlu1 %v3105_v56, %s2702_s8  ;;  %v4732_v36 = vld [vmem:[#allocation29_spill] sm:$0xff]  ;;  %v4733_v56 = vld [vmem:[#allocation23_spill] sm:$0xff] }
 0x1ad   : > { %1109 = vrot.lane.b32.xlu0 %v3078_v48, %s2702_s8  ;;  %4738 = vst [vmem:[#allocation23_spill] sm:$0xff] %v3626_v17 }
 0x1ae   : > { %v3590_v40 = vpop.permute.xlu2 %983  ;;  %v3592_v62 = vpop.permute.xlu1 %963 }
 0x1af   : > { %v3594_v63 = vpop.permute.xlu0 %961 }
 0x1b0   : > { %4730 = vst [vmem:[#allocation109_spill] sm:$0xff] %v3594_v63  ;;  %v4735_v63 = vld [vmem:[#allocation33_spill] sm:$0xff] }
 0x1b4   : > { %1119 = vrot.lane.b32.xlu2 %v4731_v42, %s2702_s8  ;;  %1117 = vrot.lane.b32.xlu1 %v4732_v36, %s2702_s8  ;;  %v4736_v42 = vld [vmem:[#allocation27_spill] sm:$0xff] }
 0x1b5   : > { %1115 = vrot.lane.b32.xlu0 %v4733_v56, %s2702_s8 }
 0x1b6   : > { %v3602_v57 = vpop.permute.xlu2 %989  ;;  %v3604_v48 = vpop.permute.xlu1 %969 }
 0x1b7   : > { %v3606_v46 = vpop.permute.xlu0 %967 }
 0x1bc   : > { %1125 = vrot.lane.b32.xlu2 %v3609_v23, %s2702_s8  ;;  %1123 = vrot.lane.b32.xlu1 %v4735_v63, %s2702_s8  ;;  %v4739_v23 = vld [vmem:[#allocation37_spill] sm:$0xff] }
 0x1bd   : > { %1121 = vrot.lane.b32.xlu0 %v4736_v42, %s2702_s8  ;;  %v1568_v63 = vsel %vm1545_vm0, %v4740_v5, %v4739_v23  ;;  %v4742_v5 = vld [vmem:[#allocation12_spill] sm:$0xff] }
 0x1be   : > { %v3617_v18 = vpop.permute.xlu2 %995  ;;  %v3619_v56 = vpop.permute.xlu1 %975  ;;  %v1601_v42 = vsel %vm1578_vm1, %v1568_v63, %v3372_v61  ;;  %v4744_v63 = vld [vmem:[#allocation42_spill] sm:$0xff] }
 0x1bf   : > { %4737 = vst [vmem:[#allocation29_spill] sm:$0xff] %v3617_v18  ;;  %v3621_v38 = vpop.permute.xlu0 %973  ;;  %v1634_v41 = vsel %vm1611_vm2, %v1601_v42, %v3452_v22  ;;  %v4743_v18 = vld [vmem:[#allocation35_spill] sm:$0xff]  ;;  %v1571_v22 = vsel %vm1545_vm0, %v4746_v59, %v4745_v28  ;;  %v4747_v42 = vld [vmem:[#allocation46_spill] sm:$0xff] }
 0x1c0   : > { %v1549_v61 = vsel %vm1545_vm0, %v4743_v18, %v4742_v5  ;;  %v1604_v18 = vsel %vm1578_vm1, %v1571_v22, %v3384_v1  ;;  %v4751_v28 = vld [vmem:[#allocation82_spill] sm:$0xff] }
 0x1c4   : > { %1195 = vrot.lane.b32.xlu2 %v2399_v51, %s2703_s9  ;;  %1193 = vrot.lane.b32.xlu1 %v2398_v12, %s2703_s9  ;;  %v2402_v12 = vld [vmem:[%s2787_s30 + $0x60] sm:$0xff] }
 0x1c5   : > { %1127 = vrot.lane.b32.xlu0 %v3626_v17, %s2702_s8  ;;  %v1582_v17 = vsel %vm1578_vm1, %v1549_v61, %v4744_v63  ;;  %v4750_v61 = vld [vmem:[#allocation40_spill] sm:$0xff] }
 0x1c6   : > { %v3639_v11 = vpop.permute.xlu2 %1065  ;;  %v982_v10 = vpop.permute.xlu1 %981  ;;  %v1615_v5 = vsel %vm1611_vm2, %v1582_v17, %v3418_v14 }
 0x1c7   : > { %4741 = vst [vmem:[#allocation33_spill] sm:$0xff] %v3639_v11  ;;  %v3642_v23 = vsel %vm1644_vm3, %v1634_v41, %v982_v10  ;;  %v3644_v51 = vpop.permute.xlu0 %979  ;;  %v4748_v10 = vld [vmem:[#allocation44_spill] sm:$0xff]  ;;  %v4749_v41 = vld [vmem:[#allocation74_spill] sm:$0xff]  ;;  %v1648_v63 = vsel %vm1644_vm3, %v1615_v5, %v3558_v45  ;;  %v4752_v45 = vld [vmem:[#allocation51_spill] sm:$0xff] }
 0x1c8   : > { %v1570_v11 = vsel %vm1545_vm0, %v4749_v41, %v4748_v10  ;;  %v4754_v5 = vld [vmem:[#allocation80_spill] sm:$0xff] }
 0x1c9   : > { %v1603_v59 = vsel %vm1578_vm1, %v1570_v11, %v4751_v28  ;;  %v4755_v28 = vld [vmem:[#allocation45_spill] sm:$0xff] }
 0x1ca   : > { %v1636_v1 = vsel %vm1611_vm2, %v1603_v59, %v3508_v20 }
 0x1cc   : > { %1201 = vrot.lane.b32.xlu2 %v2402_v12, %s2703_s9  ;;  %1199 = vrot.lane.b32.xlu1 %v4747_v42, %s2703_s9  ;;  %v1637_v12 = vsel %vm1611_vm2, %v1604_v18, %v3464_v25  ;;  %v2405_v25 = vld [vmem:[%s2787_s30 + $0x80] sm:$0xff] }
 0x1cd   : > { %1197 = vrot.lane.b32.xlu0 %v4750_v61, %s2703_s9  ;;  %v4753_v18 = vld [vmem:[#allocation49_spill] sm:$0xff] }
 0x1ce   : > { %v1072_v10 = vpop.permute.xlu2 %1071  ;;  %v988_v41 = vpop.permute.xlu1 %987  ;;  %v1573_v20 = vsel %vm1545_vm0, %v4754_v5, %v4753_v18 }
 0x1cf   : > { %v3676_v14 = vsel %vm1677_vm4, %v1648_v63, %v1072_v10  ;;  %v3679_v17 = vsel %vm1644_vm3, %v1637_v12, %v988_v41  ;;  %v986_v11 = vpop.permute.xlu0 %985  ;;  %v1606_v59 = vsel %vm1578_vm1, %v1573_v20, %v3338_v60  ;;  %v4758_v60 = vld [vmem:[#allocation57_spill] sm:$0xff]  ;;  %v4759_v20 = vld [vmem:[#allocation50_spill] sm:$0xff] }
 0x1d0   : > { %v3682_v22 = vsel %vm1644_vm3, %v1636_v1, %v986_v11  ;;  %v1639_v10 = vsel %vm1611_vm2, %v1606_v59, %v3520_v39  ;;  %v2408_v11 = vld [vmem:[%s2787_s30 + $0xa8] sm:$0xff] }
 0x1d4   : > { %1207 = vrot.lane.b32.xlu2 %v2405_v25, %s2703_s9  ;;  %1205 = vrot.lane.b32.xlu1 %v4752_v45, %s2703_s9  ;;  %v4757_v25 = vld [vmem:[#allocation53_spill] sm:$0xff] }
 0x1d5   : > { %1203 = vrot.lane.b32.xlu0 %v4755_v28, %s2703_s9  ;;  %v1577_v18 = vsel %vm1545_vm0, %v3349_v49, %v4757_v25  ;;  %v4762_v25 = vld [vmem:[#allocation34_spill] sm:$0xff] }
 0x1d6   : > { %v3695_v12 = vpop.permute.xlu2 %1077  ;;  %v3697_v63 = vpop.permute.xlu1 %993  ;;  %v1610_v5 = vsel %vm1578_vm1, %v1577_v18, %v3408_v6  ;;  %v4763_v18 = vld [vmem:[#allocation59_spill] sm:$0xff] }
 0x1d7   : > { %4756 = vst [vmem:[#allocation27_spill] sm:$0xff] %v3695_v12  ;;  %v992_v41 = vpop.permute.xlu0 %991  ;;  %v1643_v39 = vsel %vm1611_vm2, %v1610_v5, %v3494_v27  ;;  %v4764_v27 = vld [vmem:[#allocation63_spill] sm:$0xff] }
 0x1d8   : > { %v3702_v1 = vsel %vm1644_vm3, %v1639_v10, %v992_v41  ;;  %v2411_v41 = vld [vmem:[%s2787_s30 + $0xc8] sm:$0xff] }
 0x1dc   : > { %1213 = vrot.lane.b32.xlu2 %v2408_v11, %s2703_s9  ;;  %1211 = vrot.lane.b32.xlu1 %v4758_v60, %s2703_s9  ;;  %v4761_v11 = vld [vmem:[#allocation9_spill] sm:$0xff] }
 0x1dd   : > { %1209 = vrot.lane.b32.xlu0 %v4759_v20, %s2703_s9  ;;  %v1548_v6 = vsel %vm1545_vm0, %v4762_v25, %v4761_v11 }
 0x1de   : > { %v3717_v28 = vpop.permute.xlu2 %1083  ;;  %v1000_v59 = vpop.permute.xlu1 %999  ;;  %v1581_v20 = vsel %vm1578_vm1, %v1548_v6, %v4763_v18  ;;  %v2414_v6 = vld [vmem:[%s2787_s30 + $0xf0] sm:$0xff]  ;;  %v4767_v18 = vld [vmem:[#allocation26_spill] sm:$0xff] }
 0x1df   : > { %4760 = vst [vmem:[#allocation37_spill] sm:$0xff] %v3717_v28  ;;  %v3720_v49 = vsel %vm1644_vm3, %v1643_v39, %v1000_v59  ;;  %v3722_v10 = vpop.permute.xlu0 %997  ;;  %v1614_v5 = vsel %vm1611_vm2, %v1581_v20, %v3420_v9  ;;  %v4765_v39 = vld [vmem:[#allocation56_spill] sm:$0xff] }
 0x1e0   : > { %v1647_v59 = vsel %vm1644_vm3, %v1614_v5, %v3506_v34  ;;  %v1561_v9 = vsel %vm1545_vm0, %v4765_v39, %v4767_v18  ;;  %v4768_v20 = vld [vmem:[#allocation64_spill] sm:$0xff]  ;;  %v4769_v34 = vld [vmem:[#allocation69_spill] sm:$0xff] }
 0x1e1   : > { %v1594_v12 = vsel %vm1578_vm1, %v1561_v9, %v4768_v20  ;;  %v2446_v18 = vld [vmem:[%s2787_s30 + $0xf1] sm:$0xff] }
 0x1e2   : > { %v1627_v5 = vsel %vm1611_vm2, %v1594_v12, %v3466_v21  ;;  %v4773_v9 = vld [vmem:[#allocation32_spill] sm:$0xff]  ;;  %v4774_v12 = vld [vmem:[#allocation70_spill] sm:$0xff] }
 0x1e4   : > { %1219 = vrot.lane.b32.xlu2 %v2411_v41, %s2703_s9  ;;  %1217 = vrot.lane.b32.xlu1 %v4764_v27, %s2703_s9 }
 0x1e5   : > { %1215 = vrot.lane.b32.xlu0 %v4765_v39, %s2703_s9 }
 0x1e6   : > { %v3739_v28 = vpop.permute.xlu2 %1089  ;;  %v1070_v11 = vpop.permute.xlu1 %1069 }
 0x1e7   : > { %4766 = vst [vmem:[#allocation75_spill] sm:$0xff] %v3739_v28  ;;  %v3742_v25 = vsel %vm1677_vm4, %v1647_v59, %v1070_v11  ;;  %v3744_v41 = vpop.permute.xlu0 %1067  ;;  %v4770_v59 = vld [vmem:[#allocation62_spill] sm:$0xff]  ;;  %v1660_v11 = vsel %vm1644_vm3, %v1627_v5, %v3606_v46 }
 0x1e8   : > { %v1564_v21 = vsel %vm1545_vm0, %v4770_v59, %v4773_v9 }
 0x1e9   : > { %v1597_v20 = vsel %vm1578_vm1, %v1564_v21, %v4774_v12  ;;  %v2478_v21 = vld [vmem:[%s2787_s30 + $0xf2] sm:$0xff] }
 0x1ea   : > { %v1630_v46 = vsel %vm1611_vm2, %v1597_v20, %v3478_v29  ;;  %v2454_v12 = vld [vmem:[%s2787_s30 + $0x151] sm:$0xff] }
 0x1eb   : > { %v1663_v5 = vsel %vm1644_vm3, %v1630_v46, %v3621_v38  ;;  %v4778_v20 = vld [vmem:[#allocation76_spill] sm:$0xff] }
 0x1ec   : > { %1225 = vrot.lane.b32.xlu2 %v2414_v6, %s2703_s9  ;;  %1223 = vrot.lane.b32.xlu1 %v4769_v34, %s2703_s9 }
 0x1ed   : > { %1221 = vrot.lane.b32.xlu0 %v4770_v59, %s2703_s9 }
 0x1ee   : > { %v1096_v28 = vpop.permute.xlu2 %1095  ;;  %v3761_v61 = vpop.permute.xlu1 %1075 }
 0x1ef   : > { %4771 = vst [vmem:[#allocation12_spill] sm:$0xff] %v3761_v61  ;;  %v3764_v39 = vsel %vm1677_vm4, %v1660_v11, %v1096_v28  ;;  %v3766_v6 = vpop.permute.xlu0 %1073  ;;  %v4775_v28 = vld [vmem:[#allocation68_spill] sm:$0xff] }
 0x1f0   : > { %4772 = vst [vmem:[#allocation35_spill] sm:$0xff] %v3764_v39  ;;  %v4777_v39 = vld [vmem:[#allocation38_spill] sm:$0xff] }
 0x1f1   : > { %v1567_v29 = vsel %vm1545_vm0, %v4775_v28, %v4777_v39 }
 0x1f2   : > { %v1600_v61 = vsel %vm1578_vm1, %v1567_v29, %v4778_v20  ;;  %v2438_v29 = vld [vmem:[%s2787_s30 + $0x91] sm:$0xff] }
 0x1f3   : > { %v1633_v38 = vsel %vm1611_vm2, %v1600_v61, %v3496_v31  ;;  %v4780_v20 = vld [vmem:[#allocation11_spill] sm:$0xff]  ;;  %v4782_v31 = vld [vmem:[#allocation21_spill] sm:$0xff] }
 0x1f4   : > { %1353 = vrot.lane.b32.xlu2 %v2446_v18, %s2704_s10  ;;  %1241 = vrot.lane.b32.xlu1 %v3330_v35, %s2703_s9  ;;  %v1666_v46 = vsel %vm1644_vm3, %v1633_v38, %v3644_v51  ;;  %v1559_v61 = vsel %vm1545_vm0, %v4758_v60, %v4782_v31  ;;  %v4784_v38 = vld [vmem:[#allocation85_spill] sm:$0xff] }
 0x1f5   : > { %1227 = vrot.lane.b32.xlu0 %v4775_v28, %s2703_s9 }
 0x1f6   : > { %v1102_v11 = vpop.permute.xlu2 %1101  ;;  %v3783_v59 = vpop.permute.xlu1 %1081 }
 0x1f7   : > { %v3786_v9 = vsel %vm1677_vm4, %v1663_v5, %v1102_v11  ;;  %v3788_v18 = vpop.permute.xlu0 %1079 }
 0x1f8   : > { %4776 = vst [vmem:[#allocation42_spill] sm:$0xff] %v3786_v9 }
 0x1fc   : > { %1497 = vrot.lane.b32.xlu2 %v4732_v36, %s2705_s11  ;;  %1481 = vrot.lane.b32.xlu1 %v2478_v21, %s2705_s11  ;;  %v2430_v36 = vld [vmem:[%s2787_s30 + $0x31] sm:$0xff] }
 0x1fd   : > { %1369 = vrot.lane.b32.xlu0 %v2454_v12, %s2704_s10  ;;  %v4781_v21 = vld [vmem:[#allocation55_spill] sm:$0xff] }
 0x1fe   : > { %v1108_v5 = vpop.permute.xlu2 %1107  ;;  %v3805_v11 = vpop.permute.xlu1 %1087  ;;  %v1560_v9 = vsel %vm1545_vm0, %v4781_v21, %v4780_v20  ;;  %v4783_v12 = vld [vmem:[#allocation83_spill] sm:$0xff] }
 0x1ff   : > { %v3808_v39 = vsel %vm1677_vm4, %v1666_v46, %v1108_v5  ;;  %v3810_v28 = vpop.permute.xlu0 %1085  ;;  %v1593_v51 = vsel %vm1578_vm1, %v1560_v9, %v4783_v12  ;;  %v4785_v46 = vld [vmem:[#allocation84_spill] sm:$0xff] }
 0x200   : > { %4779 = vst [vmem:[#allocation43_spill] sm:$0xff] %v3808_v39  ;;  %v1592_v5 = vsel %vm1578_vm1, %v1559_v61, %v4785_v46  ;;  %v1626_v20 = vsel %vm1611_vm2, %v1593_v51, %v3468_v26  ;;  %v2470_v51 = vld [vmem:[%s2787_s30 + $0x92] sm:$0xff]  ;;  %v4788_v39 = vld [vmem:[#allocation25_spill] sm:$0xff] }
 0x201   : > { %v1625_v60 = vsel %vm1611_vm2, %v1592_v5, %v3416_v13  ;;  %v1659_v9 = vsel %vm1644_vm3, %v1626_v20, %v3554_v52  ;;  %v2447_v13 = vld [vmem:[%s2787_s30 + $0xf9] sm:$0xff]  ;;  %v4786_v52 = vld [vmem:[#allocation14_spill] sm:$0xff] }
 0x202   : > { %v1658_v12 = vsel %vm1644_vm3, %v1625_v60, %v3592_v62  ;;  %v2462_v46 = vld [vmem:[%s2787_s30 + $0x32] sm:$0xff]  ;;  %v4787_v5 = vld [vmem:[#allocation61_spill] sm:$0xff]  ;;  %v1562_v62 = vsel %vm1545_vm0, %v4764_v27, %v4788_v39 }
 0x203   : > { %v1563_v20 = vsel %vm1545_vm0, %v4787_v5, %v4786_v52  ;;  %v2479_v5 = vld [vmem:[%s2787_s30 + $0xfa] sm:$0xff] }
 0x204   : > { %1243 = vrot.lane.b32.xlu2 %v4784_v38, %s2703_s9  ;;  %1337 = vrot.lane.b32.xlu1 %v2438_v29, %s2704_s10 }
 0x205   : > { %1321 = vrot.lane.b32.xlu0 %v2430_v36, %s2704_s10 }
 0x206   : > { %v1114_v21 = vpop.permute.xlu2 %1113  ;;  %v1094_v31 = vpop.permute.xlu1 %1093 }
 0x207   : > { %v3838_v29 = vsel %vm1677_vm4, %v3682_v22, %v1114_v21  ;;  %v3841_v61 = vsel %vm1677_vm4, %v1659_v9, %v1094_v31  ;;  %v1092_v26 = vpop.permute.xlu0 %1091  ;;  %v4789_v22 = vld [vmem:[#allocation87_spill] sm:$0xff]  ;;  %v4790_v9 = vld [vmem:[#allocation88_spill] sm:$0xff] }
 0x208   : > { %v3844_v36 = vsel %vm1677_vm4, %v1658_v12, %v1092_v26  ;;  %v1596_v60 = vsel %vm1578_vm1, %v1563_v20, %v4789_v22  ;;  %v1595_v21 = vsel %vm1578_vm1, %v1562_v62, %v4790_v9  ;;  %v2455_v20 = vld [vmem:[%s2787_s30 + $0x159] sm:$0xff]  ;;  %v4792_v62 = vld [vmem:[#allocation67_spill] sm:$0xff] }
 0x209   : > { %v1629_v31 = vsel %vm1611_vm2, %v1596_v60, %v3480_v24  ;;  %v1628_v27 = vsel %vm1611_vm2, %v1595_v21, %v3428_v16  ;;  %v2487_v16 = vld [vmem:[%s2787_s30 + $0x15a] sm:$0xff]  ;;  %v4793_v60 = vld [vmem:[#allocation54_spill] sm:$0xff]  ;;  %v4795_v9 = vld [vmem:[#allocation31_spill] sm:$0xff] }
 0x20a   : > { %v1662_v39 = vsel %vm1644_vm3, %v1629_v31, %v3566_v58  ;;  %v4791_v58 = vld [vmem:[#allocation17_spill] sm:$0xff]  ;;  %v1565_v21 = vsel %vm1545_vm0, %v4769_v34, %v4795_v9 }
 0x20b   : > { %v1566_v22 = vsel %vm1545_vm0, %v4792_v62, %v4791_v58  ;;  %v4796_v58 = vld [vmem:[#allocation13_spill] sm:$0xff] }
 0x20c   : > { %1355 = vrot.lane.b32.xlu2 %v2447_v13, %s2704_s10  ;;  %1465 = vrot.lane.b32.xlu1 %v2470_v51, %s2705_s11  ;;  %v1661_v13 = vsel %vm1644_vm3, %v1628_v27, %v3604_v48  ;;  %v4794_v48 = vld [vmem:[#allocation86_spill] sm:$0xff]  ;;  %v1599_v27 = vsel %vm1578_vm1, %v1566_v22, %v3358_v50  ;;  %v2431_v62 = vld [vmem:[%s2787_s30 + $0x39] sm:$0xff] }
 0x20d   : > { %1449 = vrot.lane.b32.xlu0 %v2462_v46, %s2705_s11  ;;  %v4797_v22 = vld [vmem:[#allocation20_spill] sm:$0xff] }
 0x20e   : > { %v1120_v12 = vpop.permute.xlu2 %1119  ;;  %v1100_v26 = vpop.permute.xlu1 %1099 }
 0x20f   : > { %v3872_v51 = vsel %vm1677_vm4, %v3702_v1, %v1120_v12  ;;  %v3875_v52 = vsel %vm1677_vm4, %v1662_v39, %v1100_v26  ;;  %v1098_v24 = vpop.permute.xlu0 %1097  ;;  %v1576_v1 = vsel %vm1545_vm0, %v4794_v48, %v4793_v60  ;;  %v1598_v39 = vsel %vm1578_vm1, %v1565_v21, %v3360_v54  ;;  %v4798_v60 = vld [vmem:[#allocation73_spill] sm:$0xff] }
 0x210   : > { %v3878_v46 = vsel %vm1677_vm4, %v1661_v13, %v1098_v24  ;;  %v1609_v31 = vsel %vm1578_vm1, %v1576_v1, %v3356_v55  ;;  %v1632_v12 = vsel %vm1611_vm2, %v1599_v27, %v3498_v32  ;;  %v1631_v50 = vsel %vm1611_vm2, %v1598_v39, %v3440_v19  ;;  %v228_v24 = vld [vmem:[%s2787_s30 + $0x8] sm:$0xff]  ;;  %v4799_v1 = vld [vmem:[#allocation60_spill] sm:$0xff] }
 0x211   : > { %v1642_v34 = vsel %vm1611_vm2, %v1609_v31, %v3532_v43  ;;  %v1665_v55 = vsel %vm1644_vm3, %v1632_v12, %v3578_v2  ;;  %v1664_v32 = vsel %vm1644_vm3, %v1631_v50, %v3619_v56  ;;  %v2416_v2 = vld [vmem:[%s2787_s30 + $0x108] sm:$0xff]  ;;  %v1569_v56 = vsel %vm1545_vm0, %v4798_v60, %v4797_v22 }
 0x212   : > { %v1675_v26 = vsel %vm1644_vm3, %v1642_v34, %v3722_v10  ;;  %v1547_v10 = vsel %vm1545_vm0, %v228_v24, %v4796_v58  ;;  %v1602_v31 = vsel %vm1578_vm1, %v1569_v56, %v3370_v30 }
 0x213   : > { %v1580_v9 = vsel %vm1578_vm1, %v1547_v10, %v4799_v1  ;;  %v1635_v27 = vsel %vm1611_vm2, %v1602_v31, %v3510_v15  ;;  %v4806_v31 = vld [vmem:[#allocation30_spill] sm:$0xff] }
 0x214   : > { %1499 = vrot.lane.b32.xlu2 %v2487_v16, %s2705_s11  ;;  %1483 = vrot.lane.b32.xlu1 %v2479_v5, %s2705_s11  ;;  %v1613_v21 = vsel %vm1611_vm2, %v1580_v9, %v3368_v44  ;;  %v1668_v44 = vsel %vm1644_vm3, %v1635_v27, %v3590_v40  ;;  %v4801_v40 = vld [vmem:[#allocation41_spill] sm:$0xff]  ;;  %v2456_v9 = vld [vmem:[%s2787_s30 + $0x169] sm:$0xff]  ;;  %v1575_v27 = vsel %vm1545_vm0, %v4784_v38, %v4806_v31 }
 0x215   : > { %1371 = vrot.lane.b32.xlu0 %v2455_v20, %s2704_s10  ;;  %v2439_v20 = vld [vmem:[%s2787_s30 + $0x99] sm:$0xff]  ;;  %v1646_v39 = vsel %vm1644_vm3, %v1613_v21, %v3544_v47  ;;  %v4805_v21 = vld [vmem:[#allocation15_spill] sm:$0xff] }
 0x216   : > { %v1126_v54 = vpop.permute.xlu2 %1125  ;;  %v1106_v13 = vpop.permute.xlu1 %1105  ;;  %v1679_v30 = vsel %vm1677_vm4, %v1646_v39, %v3744_v41  ;;  %v4802_v41 = vld [vmem:[#allocation24_spill] sm:$0xff] }
 0x217   : > { %v3915_v43 = vsel %vm1677_vm4, %v1675_v26, %v1126_v54  ;;  %v3918_v16 = vsel %vm1677_vm4, %v1665_v55, %v1106_v13  ;;  %v1104_v5 = vpop.permute.xlu0 %1103  ;;  %v2471_v26 = vld [vmem:[%s2787_s30 + $0x9a] sm:$0xff] }
 0x218   : > { %v3921_v19 = vsel %vm1677_vm4, %v1664_v32, %v1104_v5  ;;  %v2463_v54 = vld [vmem:[%s2787_s30 + $0x3a] sm:$0xff]  ;;  %v4803_v32 = vld [vmem:[#allocation79_spill] sm:$0xff] }
 0x219   : > { %v4800_v13 = vld [vmem:[#allocation5_spill] sm:$0xff]  ;;  %v1572_v5 = vsel %vm1545_vm0, %v4803_v32, %v4802_v41  ;;  %v4807_v39 = vld [vmem:[#allocation72_spill] sm:$0xff] }
 0x21a   : > { %v1550_v24 = vsel %vm1545_vm0, %v4801_v40, %v4800_v13 }
 0x21c   : > { %1229 = vrot.lane.b32.xlu2 %v2416_v2, %s2703_s9  ;;  %1339 = vrot.lane.b32.xlu1 %v2439_v20, %s2704_s10  ;;  %v4804_v2 = vld [vmem:[#allocation66_spill] sm:$0xff] }
 0x21d   : > { %1323 = vrot.lane.b32.xlu0 %v2431_v62, %s2704_s10  ;;  %v1583_v20 = vsel %vm1578_vm1, %v1550_v24, %v4804_v2  ;;  %v227_v24 = vld [vmem:[%s2787_s30] sm:$0xff] }
 0x21e   : > { %v1196_v12 = vpop.permute.xlu2 %1195  ;;  %v1112_v34 = vpop.permute.xlu1 %1111  ;;  %v1616_v58 = vsel %vm1611_vm2, %v1583_v20, %v3380_v0  ;;  %v2440_v20 = vld [vmem:[%s2787_s30 + $0xa9] sm:$0xff] }
 0x21f   : > { %v3949_v50 = vsel %vm1710_vm5, %v1679_v30, %v1196_v12  ;;  %v3952_v55 = vsel %vm1677_vm4, %v1668_v44, %v1112_v34  ;;  %v1110_v15 = vpop.permute.xlu0 %1109  ;;  %v1649_v62 = vsel %vm1644_vm3, %v1616_v58, %v3556_v53  ;;  %v4808_v30 = vld [vmem:[#allocation48_spill] sm:$0xff]  ;;  %v1608_v34 = vsel %vm1578_vm1, %v1575_v27, %v3394_v8  ;;  %v2432_v58 = vld [vmem:[%s2787_s30 + $0x49] sm:$0xff]  ;;  %v4820_v27 = vld [vmem:[#allocation33_spill] sm:$0xff] }
 0x220   : > { %v3956_v47 = vsel %vm1677_vm4, %v3642_v23, %v1110_v15  ;;  %v1605_v23 = vsel %vm1578_vm1, %v1572_v5, %v3382_v4  ;;  %v1682_v4 = vsel %vm1677_vm4, %v1649_v62, %v3766_v6  ;;  %v2448_v6 = vld [vmem:[%s2787_s30 + $0x109] sm:$0xff]  ;;  %v1641_v38 = vsel %vm1611_vm2, %v1608_v34, %v3534_v37  ;;  %v4809_v15 = vld [vmem:[#allocation105_spill] sm:$0xff] }
 0x221   : > { %v1638_v10 = vsel %vm1611_vm2, %v1605_v23, %v3522_v33  ;;  %v4812_v23 = vld [vmem:[#allocation10_spill] sm:$0xff] }
 0x222   : > { %v1671_v0 = vsel %vm1644_vm3, %v1638_v10, %v3602_v57  ;;  %v1553_v57 = vsel %vm1545_vm0, %v4747_v42, %v4805_v21  ;;  %v4813_v10 = vld [vmem:[#allocation18_spill] sm:$0xff] }
 0x223   : > { %v1586_v44 = vsel %vm1578_vm1, %v1553_v57, %v4807_v39  ;;  %v1556_v62 = vsel %vm1545_vm0, %v4752_v45, %v4813_v10  ;;  %v4818_v45 = vld [vmem:[#allocation104_spill] sm:$0xff]  ;;  %v4826_v10 = vld [vmem:[#allocation65_spill] sm:$0xff] }
 0x224   : > { %1467 = vrot.lane.b32.xlu2 %v2471_v26, %s2705_s11  ;;  %1451 = vrot.lane.b32.xlu1 %v2463_v54, %s2705_s11  ;;  %v1619_v12 = vsel %vm1611_vm2, %v1586_v44, %v3392_v7  ;;  %v4810_v7 = vld [vmem:[#allocation98_spill] sm:$0xff]  ;;  %v4811_v26 = vld [vmem:[#allocation29_spill] sm:$0xff] }
 0x225   : > { %1245 = vrot.lane.b32.xlu0 %v4794_v48, %s2703_s9  ;;  %v2480_v48 = vld [vmem:[%s2787_s30 + $0x10a] sm:$0xff]  ;;  %v1674_v54 = vsel %vm1644_vm3, %v1641_v38, %v4811_v26 }
 0x226   : > { %v1202_v22 = vpop.permute.xlu2 %1201  ;;  %v1118_v60 = vpop.permute.xlu1 %1117 }
 0x227   : > { %v3985_v56 = vsel %vm1710_vm5, %v1682_v4, %v1202_v22  ;;  %v3988_v1 = vsel %vm1677_vm4, %v1671_v0, %v1118_v60  ;;  %v1116_v33 = vpop.permute.xlu0 %1115  ;;  %v4814_v0 = vld [vmem:[#allocation36_spill] sm:$0xff]  ;;  %v4815_v22 = vld [vmem:[#allocation78_spill] sm:$0xff] }
 0x228   : > { %v3992_v53 = vsel %vm1677_vm4, %v3679_v17, %v1116_v33  ;;  %v1574_v17 = vsel %vm1545_vm0, %v3330_v35, %v4808_v30  ;;  %v1652_v35 = vsel %vm1644_vm3, %v1619_v12, %v4809_v15  ;;  %v1589_v60 = vsel %vm1578_vm1, %v1556_v62, %v4815_v22  ;;  %v4816_v33 = vld [vmem:[#allocation90_spill] sm:$0xff] }
 0x229   : > { %v1607_v42 = vsel %vm1578_vm1, %v1574_v17, %v3396_v3  ;;  %v1685_v13 = vsel %vm1677_vm4, %v1652_v35, %v3788_v18  ;;  %v1546_v18 = vsel %vm1545_vm0, %v227_v24, %v4812_v23  ;;  %v2464_v15 = vld [vmem:[%s2787_s30 + $0x4a] sm:$0xff]  ;;  %v4821_v24 = vld [vmem:[#allocation16_spill] sm:$0xff] }
 0x22a   : > { %v1640_v8 = vsel %vm1611_vm2, %v1607_v42, %v4810_v7  ;;  %v1579_v4 = vsel %vm1578_vm1, %v1546_v18, %v4814_v0  ;;  %v2425_v35 = vld [vmem:[%s2787_s30 + $0x170] sm:$0xff]  ;;  %v4828_v0 = vld [vmem:[#allocation93_spill] sm:$0xff]  ;;  %v4829_v22 = vld [vmem:[#allocation106_spill] sm:$0xff] }
 0x22b   : > { %v1673_v37 = vsel %vm1644_vm3, %v1640_v8, %v3697_v63  ;;  %v2488_v63 = vld [vmem:[%s2787_s30 + $0x16a] sm:$0xff] }
 0x22c   : > { %1485 = vrot.lane.b32.xlu2 %v2480_v48, %s2705_s11  ;;  %1373 = vrot.lane.b32.xlu1 %v2456_v9, %s2704_s10  ;;  %v1622_v48 = vsel %vm1611_vm2, %v1589_v60, %v4816_v33  ;;  %v4817_v9 = vld [vmem:[#allocation91_spill] sm:$0xff]  ;;  %v4830_v33 = vld [vmem:[#allocation101_spill] sm:$0xff] }
 0x22d   : > { %1357 = vrot.lane.b32.xlu0 %v2448_v6, %s2704_s10  ;;  %v1612_v21 = vsel %vm1611_vm2, %v1579_v4, %v4817_v9  ;;  %v4819_v6 = vld [vmem:[#allocation107_spill] sm:$0xff] }
 0x22e   : > { %v1208_v3 = vpop.permute.xlu2 %1207  ;;  %v1124_v40 = vpop.permute.xlu1 %1123  ;;  %v1645_v57 = vsel %vm1644_vm3, %v1612_v21, %v4818_v45  ;;  %v1655_v31 = vsel %vm1644_vm3, %v1622_v48, %v4819_v6  ;;  %v2417_v7 = vld [vmem:[%s2787_s30 + $0x110] sm:$0xff]  ;;  %v4832_v6 = vld [vmem:[#allocation12_spill] sm:$0xff] }
 0x22f   : > { %v4031_v41 = vsel %vm1710_vm5, %v1685_v13, %v1208_v3  ;;  %v4034_v32 = vsel %vm1677_vm4, %v1674_v54, %v1124_v40  ;;  %v1122_v5 = vpop.permute.xlu0 %1121  ;;  %v1678_v39 = vsel %vm1677_vm4, %v1645_v57, %v4820_v27  ;;  %v1688_v44 = vsel %vm1677_vm4, %v1655_v31, %v3810_v28  ;;  %v2457_v3 = vld [vmem:[%s2787_s30 + $0x171] sm:$0xff] }
 0x230   : > { %v4037_v2 = vsel %vm1677_vm4, %v1673_v37, %v1122_v5  ;;  %v2449_v40 = vld [vmem:[%s2787_s30 + $0x111] sm:$0xff] }
 0x231   : > { %v4822_v37 = vld [vmem:[#allocation40_spill] sm:$0xff]  ;;  %v4824_v23 = vld [vmem:[#allocation39_spill] sm:$0xff] }
 0x232   : > { %v1552_v5 = vsel %vm1545_vm0, %v4822_v37, %v4821_v24  ;;  %v4825_v18 = vld [vmem:[#allocation47_spill] sm:$0xff]  ;;  %v2418_v24 = vld [vmem:[%s2787_s30 + $0x120] sm:$0xff] }
 0x233   : > { %v4831_v9 = vld [vmem:[#allocation27_spill] sm:$0xff] }
 0x234   : > { %1341 = vrot.lane.b32.xlu2 %v2440_v20, %s2704_s10  ;;  %1325 = vrot.lane.b32.xlu1 %v2432_v58, %s2704_s10  ;;  %v2472_v20 = vld [vmem:[%s2787_s30 + $0xaa] sm:$0xff] }
 0x235   : > { %1501 = vrot.lane.b32.xlu0 %v2488_v63, %s2705_s11  ;;  %v4823_v58 = vld [vmem:[#allocation6_spill] sm:$0xff]  ;;  %v4827_v63 = vld [vmem:[#allocation92_spill] sm:$0xff]  ;;  %v2614_v37 = vld [vmem:[%s2787_s30 + $0x90] sm:$0xff] }
 0x236   : > { %v1214_v30 = vpop.permute.xlu2 %1213  ;;  %v1194_v17 = vpop.permute.xlu1 %1193 }
 0x237   : > { %v4067_v12 = vsel %vm1710_vm5, %v1688_v44, %v1214_v30  ;;  %v4070_v34 = vsel %vm1710_vm5, %v1678_v39, %v1194_v17  ;;  %v1128_v42 = vpop.permute.xlu0 %1127  ;;  %v1813_v44 = vld [vmem:[%s4573_s1 + $0x20] sm:$0xf]  ;;  %v1812_v17 = vld [vmem:[%s4573_s1 + $0x18] sm:$0xff] }
 0x238   : > { %v4074_v38 = vsel %vm1677_vm4, %v3720_v49, %v1128_v42  ;;  %2534 = vmatpush.msk.msra.mxu2 %vm1915_vm6, %v1813_v44  ;;  %2535 = vmatpush.msk.msra.mxu3 %vm1915_vm6, %v1813_v44  ;;  %v2433_v42 = vld [vmem:[%s2787_s30 + $0x51] sm:$0xff] }
 0x239   : > { %2494 = vmatpush.msk.msra.mxu0 %vm1915_vm6, %v1813_v44  ;;  %2533 = vmatpush.msk.msra.mxu1 %vm1915_vm6, %v1813_v44 }
 0x23a   : > { %2537 = vmatpush.msra.mxu2 %v1812_v17  ;;  %2538 = vmatpush.msra.mxu3 %v1812_v17 }
 0x23b   : > { %1931 = vmatpush.msra.mxu0 %v1812_v17  ;;  %2536 = vmatpush.msra.mxu1 %v1812_v17 }
 0x23c   : > { %1453 = vrot.lane.b32.xlu2 %v2464_v15, %s2705_s11  ;;  %1247 = vrot.lane.b32.xlu1 %v2425_v35, %s2703_s9  ;;  %v2489_v15 = vld [vmem:[%s2787_s30 + $0x172] sm:$0xff] }
 0x23d   : > { %1231 = vrot.lane.b32.xlu0 %v2417_v7, %s2703_s9  ;;  %v2481_v35 = vld [vmem:[%s2787_s30 + $0x112] sm:$0xff] }
 0x23e   : > { %v1220_v28 = vpop.permute.xlu2 %1219  ;;  %v1200_v8 = vpop.permute.xlu1 %1199  ;;  %v1811_v7 = vld [vmem:[%s4573_s1 + $0x10] sm:$0xff] }
 0x23f   : > { %v4084_v26 = vsel %vm1710_vm5, %v3844_v36, %v1220_v28  ;;  %v4088_v49 = vsel %vm1710_vm5, %v3676_v14, %v1200_v8  ;;  %v1198_v54 = vpop.permute.xlu0 %1197  ;;  %v1551_v36 = vsel %vm1545_vm0, %v4824_v23, %v4823_v58  ;;  %v1585_v14 = vsel %vm1578_vm1, %v1552_v5, %v4825_v18  ;;  %2540 = vmatpush.msra.mxu2 %v1811_v7  ;;  %v1810_v28 = vld [vmem:[%s4573_s1 + $0x8] sm:$0xff]  ;;  %v2441_v58 = vld [vmem:[%s2787_s30 + $0xb1] sm:$0xff]  ;;  %v2615_v23 = vld [vmem:[%s2787_s30 + $0x80] sm:$0xff] }
 0x240   : > { %v4092_v13 = vsel %vm1710_vm5, %v3742_v25, %v1198_v54  ;;  %v1584_v62 = vsel %vm1578_vm1, %v1551_v36, %v4826_v10  ;;  %v1618_v25 = vsel %vm1611_vm2, %v1585_v14, %v4827_v63  ;;  %2541 = vmatpush.msra.mxu3 %v1811_v7  ;;  %1932 = vmatpush.msra.mxu0 %v1811_v7  ;;  %v4833_v5 = vld [vmem:[#allocation22_spill] sm:$0xff]  ;;  %v4834_v36 = vld [vmem:[#allocation8_spill] sm:$0xff] }
 0x241   : > { %v1617_v4 = vsel %vm1611_vm2, %v1584_v62, %v4828_v0  ;;  %v1651_v60 = vsel %vm1644_vm3, %v1618_v25, %v4829_v22  ;;  %2543 = vmatpush.msra.mxu2 %v1810_v28  ;;  %2539 = vmatpush.msra.mxu1 %v1811_v7  ;;  %v1557_v18 = vsel %vm1545_vm0, %v2615_v23, %v4834_v36  ;;  %v4835_v14 = vld [vmem:[#allocation58_spill] sm:$0xff]  ;;  %v4836_v62 = vld [vmem:[#allocation77_spill] sm:$0xff]  ;;  %v4837_v25 = vld [vmem:[#allocation96_spill] sm:$0xff] }
 0x242   : > { %v1650_v48 = vsel %vm1644_vm3, %v1617_v4, %v4830_v33  ;;  %v1684_v21 = vsel %vm1677_vm4, %v1651_v60, %v4831_v9  ;;  %2544 = vmatpush.msra.mxu3 %v1810_v28  ;;  %1933 = vmatpush.msra.mxu0 %v1810_v28  ;;  %v1590_v63 = vsel %vm1578_vm1, %v1557_v18, %v4836_v62  ;;  %v4838_v4 = vld [vmem:[#allocation89_spill] sm:$0xff]  ;;  %v4841_v9 = vld [vmem:[#allocation103_spill] sm:$0xff]  ;;  %v4844_v23 = vld [vmem:[#allocation28_spill] sm:$0xff] }
 0x243   : > { %v1683_v31 = vsel %vm1677_vm4, %v1650_v48, %v4832_v6  ;;  %2542 = vmatpush.msra.mxu1 %v1810_v28  ;;  %v4839_v22 = vld [vmem:[#allocation97_spill] sm:$0xff]  ;;  %v2473_v7 = vld [vmem:[%s2787_s30 + $0xb2] sm:$0xff]  ;;  %v2419_v62 = vld [vmem:[%s2787_s30 + $0x128] sm:$0xff] }
 0x244   : > { %1375 = vrot.lane.b32.xlu2 %v2457_v3, %s2704_s10  ;;  %1359 = vrot.lane.b32.xlu1 %v2449_v40, %s2704_s10  ;;  %v1809_v40 = vld [vmem:[%s4573_s1] sm:$0xff]  ;;  %v1623_v60 = vsel %vm1611_vm2, %v1590_v63, %v4839_v22  ;;  %v2465_v28 = vld [vmem:[%s2787_s30 + $0x52] sm:$0xff] }
 0x245   : > { %1469 = vrot.lane.b32.xlu0 %v2472_v20, %s2705_s11  ;;  %2546 = vmatpush.msra.mxu2 %v1809_v40  ;;  %v1558_v20 = vsel %vm1545_vm0, %v2614_v37, %v4833_v5  ;;  %v4840_v33 = vld [vmem:[#allocation109_spill] sm:$0xff]  ;;  %v4845_v36 = vld [vmem:[#allocation100_spill] sm:$0xff] }
 0x246   : > { %v4120_v45 = vpop.permute.xlu2 %1225  ;;  %v1206_v57 = vpop.permute.xlu1 %1205  ;;  %2547 = vmatpush.msra.mxu3 %v1809_v40  ;;  %1934 = vmatpush.msra.mxu0 %v1809_v40  ;;  %v1591_v10 = vsel %vm1578_vm1, %v1558_v20, %v4835_v14  ;;  %v2442_v63 = vld [vmem:[%s2787_s30 + $0xc1] sm:$0xff] }
 0x247   : > { %v4125_v27 = vsel %vm1710_vm5, %v1684_v21, %v1206_v57  ;;  %v1204_v39 = vpop.permute.xlu0 %1203  ;;  %2545 = vmatpush.msra.mxu1 %v1809_v40  ;;  %v1624_v0 = vsel %vm1611_vm2, %v1591_v10, %v4837_v25  ;;  %v1656_v21 = vsel %vm1644_vm3, %v1623_v60, %v4841_v9  ;;  %v4842_v57 = vld [vmem:[#allocation75_spill] sm:$0xff]  ;;  %v2434_v25 = vld [vmem:[%s2787_s30 + $0x61] sm:$0xff] }
 0x248   : > { %v4131_v30 = vsel %vm1710_vm5, %v1683_v31, %v1204_v39  ;;  %v1657_v48 = vsel %vm1644_vm3, %v1624_v0, %v4840_v33  ;;  %v1689_v44 = vsel %vm1677_vm4, %v1656_v21, %v3805_v11  ;;  %v2466_v21 = vld [vmem:[%s2787_s30 + $0x62] sm:$0xff] }
 0x249   : > { %v1690_v6 = vsel %vm1677_vm4, %v1657_v48, %v4842_v57 }
 0x24c   : > { %1327 = vrot.lane.b32.xlu2 %v2433_v42, %s2704_s10  ;;  %1503 = vrot.lane.b32.xlu1 %v2489_v15, %s2705_s11 }
 0x24d   : > { %1487 = vrot.lane.b32.xlu0 %v2481_v35, %s2705_s11  ;;  %v2450_v35 = vld [vmem:[%s2787_s30 + $0x121] sm:$0xff] }
 0x24e   : > { %v4148_v8 = vpop.permute.xlu2 %1353  ;;  %v4150_v54 = vpop.permute.xlu1 %1211 }
 0x24f   : > { %v4152_v3 = vpop.permute.xlu0 %1209 }
 0x254   : > { %1249 = vrot.lane.b32.xlu2 %v4838_v4, %s2703_s9  ;;  %1233 = vrot.lane.b32.xlu1 %v2418_v24, %s2703_s9  ;;  %v4843_v24 = vld [vmem:[#allocation35_spill] sm:$0xff] }
 0x255   : > { %1343 = vrot.lane.b32.xlu0 %v2441_v58, %s2704_s10  ;;  %v2482_v58 = vld [vmem:[%s2787_s30 + $0x122] sm:$0xff] }
 0x256   : > { %v1498_v31 = vpop.permute.xlu2 %1497  ;;  %v1218_v39 = vpop.permute.xlu1 %1217 }
 0x257   : > { %v4186_v17 = vsel %vm1710_vm5, %v1690_v6, %v1218_v39  ;;  %v1216_v42 = vpop.permute.xlu0 %1215  ;;  %v2616_v39 = vld [vmem:[%s2787_s30 + $0x60] sm:$0xff] }
 0x258   : > { %v4189_v15 = vsel %vm1710_vm5, %v1689_v44, %v1216_v42  ;;  %v4846_v44 = vld [vmem:[#allocation7_spill] sm:$0xff] }
 0x259   : > { %v4847_v42 = vld [vmem:[#allocation71_spill] sm:$0xff] }
 0x25c   : > { %1361 = vrot.lane.b32.xlu2 %v2450_v35, %s2704_s10  ;;  %1471 = vrot.lane.b32.xlu1 %v2473_v7, %s2705_s11  ;;  %v2483_v7 = vld [vmem:[%s2787_s30 + $0x12a] sm:$0xff] }
 0x25d   : > { %1455 = vrot.lane.b32.xlu0 %v2465_v28, %s2705_s11  ;;  %v4848_v28 = vld [vmem:[#allocation95_spill] sm:$0xff] }
 0x25e   : > { %v4197_v11 = vpop.permute.xlu2 %1243  ;;  %v1224_v40 = vpop.permute.xlu1 %1223 }
 0x25f   : > { %v4201_v37 = vsel %vm1710_vm5, %v4843_v24, %v1224_v40  ;;  %v1222_v5 = vpop.permute.xlu0 %1221  ;;  %v2451_v24 = vld [vmem:[%s2787_s30 + $0x129] sm:$0xff] }
 0x260   : > { %v4205_v20 = vsel %vm1710_vm5, %v3841_v61, %v1222_v5  ;;  %v1727_v61 = vsel %vm1710_vm5, %v3878_v46, %v4120_v45  ;;  %v2474_v45 = vld [vmem:[%s2787_s30 + $0xc2] sm:$0xff] }
 0x261   : > { %v1760_v0 = vsel %vm1743_vm7, %v1727_v61, %v4148_v8  ;;  %v2427_v8 = vld [vmem:[%s2787_s30 + $0x188] sm:$0xff] }
 0x262   : > { %v4849_v5 = vld [vmem:[#allocation102_spill] sm:$0xff] }
 0x264   : > { %1505 = vrot.lane.b32.xlu2 %v4844_v23, %s2705_s11  ;;  %1489 = vrot.lane.b32.xlu1 %v2482_v58, %s2705_s11 }
 0x265   : > { %1377 = vrot.lane.b32.xlu0 %v4845_v36, %s2704_s10  ;;  %v4850_v36 = vld [vmem:[#allocation99_spill] sm:$0xff] }
 0x266   : > { %v1356_v18 = vpop.permute.xlu2 %1355  ;;  %v1242_v14 = vpop.permute.xlu1 %1241 }
 0x267   : > { %v1228_v10 = vpop.permute.xlu0 %1227  ;;  %v1735_v60 = vsel %vm1710_vm5, %v3838_v29, %v1242_v14 }
 0x26c   : > { %1235 = vrot.lane.b32.xlu2 %v2419_v62, %s2703_s9  ;;  %1345 = vrot.lane.b32.xlu1 %v2442_v63, %s2704_s10 }
 0x26d   : > { %1329 = vrot.lane.b32.xlu0 %v2434_v25, %s2704_s10 }
 0x26e   : > { %v1500_v4 = vpop.permute.xlu2 %1499  ;;  %v1482_v22 = vpop.permute.xlu1 %1481 }
 0x26f   : > { %v1370_v33 = vpop.permute.xlu0 %1369  ;;  %v1793_v48 = vsel %vm1776_vm8, %v1760_v0, %v1482_v22 }
 0x270   : > { %v1768_v9 = vsel %vm1743_vm7, %v1735_v60, %v1370_v33  ;;  %2511 = vmatmul.msk.f32.vlgmr.msra.gmra.mxu2 %vm1818_vm9, %v1793_v48  ;;  %v2435_v60 = vld [vmem:[%s2787_s30 + $0x69] sm:$0xff]  ;;  %v1728_v33 = vsel %vm1710_vm5, %v3875_v52, %v1228_v10 }
 0x271   : > { %v1801_v46 = vsel %vm1776_vm8, %v1768_v9, %v1498_v31  ;;  %v1554_v31 = vsel %vm1545_vm0, %v2616_v39, %v4846_v44  ;;  %v2467_v44 = vld [vmem:[%s2787_s30 + $0x6a] sm:$0xff] }
 0x272   : > { %2519 = vmatmul.msk.f32.vlgmr.msra.gmra.mxu3 %vm1818_vm9, %v1801_v46  ;;  %v1587_v35 = vsel %vm1578_vm1, %v1554_v31, %v4847_v42  ;;  %v1761_v46 = vsel %vm1743_vm7, %v1728_v33, %v1356_v18  ;;  %v2428_v31 = vld [vmem:[%s2787_s30 + $0x198] sm:$0xff] }
 0x273   : > { %v1620_v40 = vsel %vm1611_vm2, %v1587_v35, %v4848_v28  ;;  %v4853_v18 = vld [vmem:[#allocation52_spill] sm:$0xff] }
 0x274   : > { %1473 = vrot.lane.b32.xlu2 %v2474_v45, %s2705_s11  ;;  %1457 = vrot.lane.b32.xlu1 %v2466_v21, %s2705_s11  ;;  %v1653_v58 = vsel %vm1644_vm3, %v1620_v40, %v4849_v5  ;;  %v1736_v45 = vsel %vm1710_vm5, %v3992_v53, %v4197_v11  ;;  %v2420_v53 = vld [vmem:[%s2787_s30 + $0x138] sm:$0xff]  ;;  %v4854_v11 = vld [vmem:[#allocation94_spill] sm:$0xff] }
 0x275   : > { %1251 = vrot.lane.b32.xlu0 %v2427_v8, %s2703_s9  ;;  %v1686_v23 = vsel %vm1677_vm4, %v1653_v58, %v3783_v59  ;;  %v2617_v8 = vld [vmem:[%s2787_s30 + $0x68] sm:$0xff]  ;;  %v2484_v33 = vld [vmem:[%s2787_s30 + $0x13a] sm:$0xff] }
 0x276   : > { %v4237_v29 = vpop.permute.xlu2 %1229  ;;  %v1338_v57 = vpop.permute.xlu1 %1337  ;;  %v1719_v14 = vsel %vm1710_vm5, %v1686_v23, %v4152_v3  ;;  %v2443_v3 = vld [vmem:[%s2787_s30 + $0xc9] sm:$0xff] }
 0x277   : > { %v1322_v6 = vpop.permute.xlu0 %1321  ;;  %v1752_v62 = vsel %vm1743_vm7, %v1719_v14, %v1338_v57  ;;  %v4852_v57 = vld [vmem:[#allocation19_spill] sm:$0xff] }
 0x278   : > { %v1744_v61 = vsel %vm1743_vm7, %v4070_v34, %v1322_v6  ;;  %v4851_v34 = vld [vmem:[#allocation23_spill] sm:$0xff]  ;;  %v1555_v6 = vsel %vm1545_vm0, %v2617_v8, %v4852_v57  ;;  %v2421_v8 = vld [vmem:[%s2787_s30 + $0x140] sm:$0xff] }
 0x279   : > { %v1588_v42 = vsel %vm1578_vm1, %v1555_v6, %v4853_v18  ;;  %v2444_v57 = vld [vmem:[%s2787_s30 + $0xd9] sm:$0xff] }
 0x27a   : > { %v1621_v35 = vsel %vm1611_vm2, %v1588_v42, %v4854_v11  ;;  %v2468_v11 = vld [vmem:[%s2787_s30 + $0x7a] sm:$0xff] }
 0x27c   : > { %1491 = vrot.lane.b32.xlu2 %v2483_v7, %s2705_s11  ;;  %1379 = vrot.lane.b32.xlu1 %v4850_v36, %s2704_s10  ;;  %v4855_v7 = vld [vmem:[#allocation108_spill] sm:$0xff] }
 0x27d   : > { %1363 = vrot.lane.b32.xlu0 %v2451_v24, %s2704_s10  ;;  %v1654_v28 = vsel %vm1644_vm3, %v1621_v35, %v4855_v7 }
 0x27e   : > { %v1468_v63 = vpop.permute.xlu2 %1467  ;;  %v1466_v25 = vpop.permute.xlu1 %1465 }
 0x27f   : > { %v1450_v0 = vpop.permute.xlu0 %1449  ;;  %v1785_v59 = vsel %vm1776_vm8, %v1752_v62, %v1466_v25  ;;  %v2460_v62 = vld [vmem:[%s2787_s30 + $0x199] sm:$0xff] }
 0x280   : > { %v1777_v22 = vsel %vm1776_vm8, %v1744_v61, %v1450_v0  ;;  %2503 = vmatmul.msk.f32.vlgmr.msra.gmra.mxu1 %vm1818_vm9, %v1785_v59  ;;  %v2452_v25 = vld [vmem:[%s2787_s30 + $0x139] sm:$0xff]  ;;  %v2475_v61 = vld [vmem:[%s2787_s30 + $0xca] sm:$0xff] }
 0x281   : > { %2495 = vmatmul.msk.f32.vlgmr.msra.gmra.mxu0 %vm1818_vm9, %v1777_v22 }
 0x284   : > { %1347 = vrot.lane.b32.xlu2 %v2443_v3, %s2704_s10  ;;  %1331 = vrot.lane.b32.xlu1 %v2435_v60, %s2704_s10  ;;  %v2436_v3 = vld [vmem:[%s2787_s30 + $0x79] sm:$0xff] }
 0x285   : > { %1507 = vrot.lane.b32.xlu0 %v4851_v34, %s2705_s11  ;;  %v2492_v60 = vld [vmem:[%s2787_s30 + $0x19a] sm:$0xff] }
 0x286   : > { %v1486_v48 = vpop.permute.xlu2 %1485  ;;  %v1484_v9 = vpop.permute.xlu1 %1483 }
 0x287   : > { %v1372_v21 = vpop.permute.xlu0 %1371  ;;  %v1794_v52 = vsel %vm1776_vm8, %v1761_v46, %v1484_v9  ;;  %v4857_v9 = vld [vmem:[#allocation42_spill] sm:$0xff] }
 0x288   : > { %v1769_v10 = vsel %vm1743_vm7, %v1736_v45, %v1372_v21  ;;  %2512 = vmatmul.msk.f32.gmra.mxu2 %vm1818_vm9, %v1794_v52  ;;  %v1729_v46 = vsel %vm1710_vm5, %v4857_v9, %v4237_v29 }
 0x289   : > { %v1802_v39 = vsel %vm1776_vm8, %v1769_v10, %v1500_v4  ;;  %v4856_v4 = vld [vmem:[#allocation37_spill] sm:$0xff] }
 0x28a   : > { %2520 = vmatmul.msk.f32.gmra.mxu3 %vm1818_vm9, %v1802_v39  ;;  %v1687_v40 = vsel %vm1677_vm4, %v1654_v28, %v4856_v4  ;;  %v2429_v10 = vld [vmem:[%s2787_s30 + $0x1a0] sm:$0xff] }
 0x28b   : > { %v1720_v24 = vsel %vm1710_vm5, %v1687_v40, %v4150_v54  ;;  %v2485_v28 = vld [vmem:[%s2787_s30 + $0x142] sm:$0xff] }
 0x28c   : > { %1459 = vrot.lane.b32.xlu2 %v2467_v44, %s2705_s11  ;;  %1253 = vrot.lane.b32.xlu1 %v2428_v31, %s2703_s9  ;;  %v2493_v4 = vld [vmem:[%s2787_s30 + $0x1a2] sm:$0xff] }
 0x28d   : > { %1237 = vrot.lane.b32.xlu0 %v2420_v53, %s2703_s9  ;;  %v2453_v53 = vld [vmem:[%s2787_s30 + $0x141] sm:$0xff] }
 0x28e   : > { %v4301_v5 = vpop.permute.xlu2 %1341  ;;  %v1340_v58 = vpop.permute.xlu1 %1339  ;;  %v2461_v40 = vld [vmem:[%s2787_s30 + $0x1a1] sm:$0xff] }
 0x28f   : > { %v1753_v23 = vsel %vm1743_vm7, %v1720_v24, %v1340_v58  ;;  %v1324_v36 = vpop.permute.xlu0 %1323  ;;  %v1754_v58 = vsel %vm1743_vm7, %v4067_v12, %v4301_v5 }
 0x290   : > { %v1786_v14 = vsel %vm1776_vm8, %v1753_v23, %v1468_v63  ;;  %v1745_v54 = vsel %vm1743_vm7, %v3949_v50, %v1324_v36 }
 0x291   : > { %2504 = vmatmul.msk.f32.gmra.mxu1 %vm1818_vm9, %v1786_v14  ;;  %v2445_v14 = vld [vmem:[%s2787_s30 + $0xe1] sm:$0xff] }
 0x294   : > { %1381 = vrot.lane.b32.xlu2 %v2460_v62, %s2704_s10  ;;  %1365 = vrot.lane.b32.xlu1 %v2452_v25, %s2704_s10  ;;  %v2469_v62 = vld [vmem:[%s2787_s30 + $0x82] sm:$0xff] }
 0x295   : > { %1475 = vrot.lane.b32.xlu0 %v2475_v61, %s2705_s11  ;;  %v2437_v61 = vld [vmem:[%s2787_s30 + $0x81] sm:$0xff] }
 0x296   : > { %v1454_v0 = vpop.permute.xlu2 %1453  ;;  %v1452_v59 = vpop.permute.xlu1 %1451 }
 0x297   : > { %v1246_v22 = vpop.permute.xlu0 %1245  ;;  %v1778_v63 = vsel %vm1776_vm8, %v1745_v54, %v1452_v59 }
 0x298   : > { %2496 = vmatmul.msk.f32.gmra.mxu0 %vm1818_vm9, %v1778_v63  ;;  %v1737_v29 = vsel %vm1710_vm5, %v3988_v1, %v1246_v22  ;;  %v2476_v1 = vld [vmem:[%s2787_s30 + $0xda] sm:$0xff] }
 0x29c   : > { %1333 = vrot.lane.b32.xlu2 %v2436_v3, %s2704_s10  ;;  %1509 = vrot.lane.b32.xlu1 %v2492_v60, %s2705_s11 }
 0x29d   : > { %1493 = vrot.lane.b32.xlu0 %v2484_v33, %s2705_s11 }
 0x29e   : > { %v1376_v50 = vpop.permute.xlu2 %1375  ;;  %v1374_v34 = vpop.permute.xlu1 %1373 }
 0x29f   : > { %v1358_v45 = vpop.permute.xlu0 %1357 }
 0x2a0   : > { %v1762_v21 = vsel %vm1743_vm7, %v1729_v46, %v1358_v45 }
 0x2a1   : > { %v1795_v52 = vsel %vm1776_vm8, %v1762_v21, %v1486_v48  ;;  %v1770_v48 = vsel %vm1743_vm7, %v1737_v29, %v1374_v34 }
 0x2a2   : > { %2513 = vmatmul.msk.f32.gmra.mxu2 %vm1818_vm9, %v1795_v52 }
 0x2a4   : > { %1255 = vrot.lane.b32.xlu2 %v2429_v10, %s2703_s9  ;;  %1239 = vrot.lane.b32.xlu1 %v2421_v8, %s2703_s9 }
 0x2a5   : > { %1349 = vrot.lane.b32.xlu0 %v2444_v57, %s2704_s10 }
 0x2a6   : > { %v1328_v6 = vpop.permute.xlu2 %1327  ;;  %v1326_v39 = vpop.permute.xlu1 %1325 }
 0x2a7   : > { %v1746_v44 = vsel %vm1743_vm7, %v4092_v13, %v1326_v39  ;;  %v1502_v31 = vpop.permute.xlu0 %1501  ;;  %v1747_v46 = vsel %vm1743_vm7, %v4088_v49, %v1328_v6 }
 0x2a8   : > { %v1803_v18 = vsel %vm1776_vm8, %v1770_v48, %v1502_v31  ;;  %v1779_v42 = vsel %vm1776_vm8, %v1746_v44, %v1454_v0 }
 0x2a9   : > { %2521 = vmatmul.msk.f32.gmra.mxu3 %vm1818_vm9, %v1803_v18  ;;  %2497 = vmatmul.msk.f32.gmra.mxu0 %vm1818_vm9, %v1779_v42 }
 0x2ac   : > { %1477 = vrot.lane.b32.xlu1 %v2476_v1, %s2705_s11  ;;  %1367 = vrot.lane.b32.xlu2 %v2453_v53, %s2704_s10 }
 0x2ad   : > { %1461 = vrot.lane.b32.xlu0 %v2468_v11, %s2705_s11 }
 0x2ae   : > { %v1248_v13 = vpop.permute.xlu1 %1247  ;;  %v1250_v7 = vpop.permute.xlu2 %1249 }
 0x2af   : > { %v1232_v35 = vpop.permute.xlu0 %1231  ;;  %v1738_v54 = vsel %vm1710_vm5, %v3872_v51, %v1248_v13  ;;  %v2477_v51 = vld [vmem:[%s2787_s30 + $0xe2] sm:$0xff]  ;;  %s208_s30 = sand.u32 1, %s2680_s13  }
 0x2b0   : > { %v1730_v12 = vsel %vm1710_vm5, %v3921_v19, %v1232_v35  ;;  %v1771_v0 = vsel %vm1743_vm7, %v1738_v54, %v1376_v50  ;;  %s2300_s9 = sshll.u32 %s208_s30, 8 }
 0x2b4   : > { %1495 = vrot.lane.b32.xlu1 %v2485_v28, %s2705_s11  ;;  %1511 = vrot.lane.b32.xlu2 %v2493_v4, %s2705_s11 }
 0x2b5   : > { %1383 = vrot.lane.b32.xlu0 %v2461_v40, %s2704_s10  ;;  %v4411_v40 = vld [vmem:[%s4574_s2] ss:$0 sm:$0xff] }
 0x2b6   : > { %v1360_v24 = vpop.permute.xlu1 %1359  ;;  %v1362_v25 = vpop.permute.xlu2 %1361 }
 0x2b7   : > { %v1470_v23 = vpop.permute.xlu0 %1469  ;;  %v1763_v59 = vsel %vm1743_vm7, %v1730_v12, %v1360_v24 }
 0x2b8   : > { %v1787_v36 = vsel %vm1776_vm8, %v1754_v58, %v1470_v23 }
 0x2b9   : > { %2505 = vmatmul.msk.f32.gmra.mxu1 %vm1818_vm9, %v1787_v36 }
 0x2bc   : > { %1351 = vrot.lane.b32.xlu1 %v2445_v14, %s2704_s10  ;;  %1463 = vrot.lane.b32.xlu2 %v2469_v62, %s2705_s11 }
 0x2bd   : > { %1335 = vrot.lane.b32.xlu0 %v2437_v61, %s2704_s10  ;;  %s4425_s10 = scalar_lea.vmem [#allocation2], %s2300_s9 }
 0x2be   : > { %v1504_v5 = vpop.permute.xlu1 %1503  ;;  %v1506_v60 = vpop.permute.xlu2 %1505  ;;  %s2176_s23 = sshll.u32 %s4425_s10, 4  ;;  %s2177_s23 = int_to_ptr.vmem [resolvable:$true] %s2176_s23 }
 0x2bf   : > { %v1488_v22 = vpop.permute.xlu0 %1487  ;;  %v1804_v63 = vsel %vm1776_vm8, %v1771_v0, %v1504_v5 }
 0x2c0   : > { %v1796_v3 = vsel %vm1776_vm8, %v1763_v59, %v1488_v22  ;;  %2522 = vmatmul.msk.f32.gmra.mxu3 %vm1818_vm9, %v1804_v63 }
 0x2c1   : > { %2514 = vmatmul.msk.f32.gmra.mxu2 %vm1818_vm9, %v1796_v3 }
 0x2c5   : > { %1479 = vrot.lane.b32.xlu0 %v2477_v51, %s2705_s11  ;;  %s2532_s11 = sshll.u32 %s2688_s15, 8  ;;  %s2161_s15 = scalar_lea.sflag [#allocation3], %s208_s30 }
 0x2c6   : > { %v1234_v33 = vpop.permute.xlu1 %1233  ;;  %v1236_v34 = vpop.permute.xlu2 %1235  ;;  %s2175_s21 = scalar_lea.hbm %s4575_s3, %s2532_s11 }
 0x2c7   : > { %v1344_v19 = vpop.permute.xlu0 %1343  ;;  %v1731_v10 = vsel %vm1710_vm5, %v3918_v16, %v1234_v33  ;;  %s2178_s26 = sshll.u32 %s2175_s21, 4  ;;  %s2179_s26 = int_to_ptr.hbm [resolvable:$true] %s2178_s26 }
 0x2c8   : > { %v1755_v50 = vsel %vm1743_vm7, %v4189_v15, %v1344_v19  ;;  %v1764_v57 = vsel %vm1743_vm7, %v1731_v10, %v1362_v25  ;;  %v1739_v15 = vsel %vm1710_vm5, %v4037_v2, %v1250_v7  ;;  %v4858_v7 = vld [vmem:[#allocation43_spill] sm:$0xff]  ;;  %s2632_s27 = sshra.s32 %s2179_s26, 4  ;;  %s2633_s27 = int_to_ptr.hbm [resolvable:$true] %s2632_s27 }
 0x2c9   : > { %s2634_s28 = scalar_lea.hbm %s2633_s27, 256  ;;  %p2639_p1 = scmp.lt.s32.totalorder %s2633_s27, %s4575_s3 }
 0x2ca   : > { %p2635_p12 = scmp.ne.s32.totalorder %s2633_s27, %s2634_s28  ;;  %p2640_p2 = scmp.lt.s32.totalorder %s2638_s6, %s2634_s28 }
 0x2cc   : > { %p2636_p13 = pnand %p2635_p12, %p2767_p4  ;;  %p2641_p3 = por %p2640_p2, %p2639_p1 }
 0x2ce   : > { %v1472_v9 = vpop.permute.xlu1 %1471  ;;  %v1474_v6 = vpop.permute.xlu2 %1473  ;;  %p2637_p0 = pneg %p2636_p13 }
 0x2cf   : > { %v1456_v45 = vpop.permute.xlu0 %1455  ;;  %v1788_v21 = vsel %vm1776_vm8, %v1755_v50, %v1472_v9 }
 0x2d0   : > { %v1780_v52 = vsel %vm1776_vm8, %v1747_v46, %v1456_v45  ;;  %2506 = vmatmul.msk.f32.gmra.mxu1 %vm1818_vm9, %v1788_v21  ;;  %p2642_p5 = pnand %p2641_p3, %p2637_p0 }
 0x2d1   : > { %2498 = vmatmul.msk.f32.gmra.mxu0 %vm1818_vm9, %v1780_v52 }
 0x2d6   : > { %v1490_v8 = vpop.permute.xlu1 %1489  ;;  %v1492_v18 = vpop.permute.xlu2 %1491 }
 0x2d7   : > { %v1378_v29 = vpop.permute.xlu0 %1377  ;;  %v1797_v49 = vsel %vm1776_vm8, %v1764_v57, %v1490_v8 }
 0x2d8   : > { %v1772_v39 = vsel %vm1743_vm7, %v1739_v15, %v1378_v29  ;;  %2515 = vmatmul.msk.f32.gmra.mxu2 %vm1818_vm9, %v1797_v49 }
 0x2d9   : > { %v1805_v48 = vsel %vm1776_vm8, %v1772_v39, %v1506_v60 }
 0x2da   : > { %2523 = vmatmul.msk.f32.gmra.mxu3 %vm1818_vm9, %v1805_v48 }
 0x2de   : > { %v1346_v44 = vpop.permute.xlu1 %1345  ;;  %v1348_v13 = vpop.permute.xlu2 %1347 }
 0x2df   : > { %v1756_v16 = vsel %vm1743_vm7, %v4186_v17, %v1346_v44  ;;  %v1330_v31 = vpop.permute.xlu0 %1329  ;;  %v1732_v17 = vsel %vm1710_vm5, %v4858_v7, %v1236_v34  ;;  %v1757_v21 = vsel %vm1743_vm7, %v4084_v26, %v1348_v13 }
 0x2e0   : > { %v1789_v2 = vsel %vm1776_vm8, %v1756_v16, %v1474_v6  ;;  %v1748_v42 = vsel %vm1743_vm7, %v3985_v56, %v1330_v31 }
 0x2e1   : > { %2507 = vmatmul.msk.f32.gmra.mxu1 %vm1818_vm9, %v1789_v2 }
 0x2e6   : > { %v1458_v1 = vpop.permute.xlu1 %1457  ;;  %v1460_v36 = vpop.permute.xlu2 %1459 }
 0x2e7   : > { %v1252_v53 = vpop.permute.xlu0 %1251  ;;  %v1781_v11 = vsel %vm1776_vm8, %v1748_v42, %v1458_v1 }
 0x2e8   : > { %2499 = vmatmul.msk.f32.gmra.mxu0 %vm1818_vm9, %v1781_v11  ;;  %v1740_v14 = vsel %vm1710_vm5, %v4034_v32, %v1252_v53 }
 0x2ee   : > { %v1380_v35 = vpop.permute.xlu1 %1379  ;;  %v1382_v34 = vpop.permute.xlu2 %1381 }
 0x2ef   : > { %v1364_v28 = vpop.permute.xlu0 %1363  ;;  %v1773_v54 = vsel %vm1743_vm7, %v1740_v14, %v1380_v35 }
 0x2f0   : > { %v1765_v4 = vsel %vm1743_vm7, %v1732_v17, %v1364_v28 }
 0x2f1   : > { %v1798_v56 = vsel %vm1776_vm8, %v1765_v4, %v1492_v18 }
 0x2f2   : > { %2516 = vmatmul.msk.f32.gmra.mxu2 %vm1818_vm9, %v1798_v56 }
 0x2f3   : > { %v1984_v24 = vpop.f32.mrf.mxu2 }
 0x2f4   : > { %v1985_v58 = vadd.f32 %v4411_v40, %v1984_v24 }
 0x2f5   : > { %v2008_v23 = vpop.f32.mrf.mxu3 }
 0x2f6   : > { %vm2048_vm10 = vcmp.gt.f32.partialorder %v1985_v58, 0.0  ;;  %v2080_v62 = vmul.f32 0.1, %v1985_v58  ;;  %v2009_v25 = vadd.f32 %v4411_v40, %v2008_v23  ;;  %v1332_v61 = vpop.permute.xlu1 %1331  ;;  %v1334_v57 = vpop.permute.xlu2 %1333 }
 0x2f7   : > { %v1749_v12 = vsel %vm1743_vm7, %v4131_v30, %v1332_v61  ;;  %v1508_v5 = vpop.permute.xlu0 %1507 }
 0x2f8   : > { %v2112_v0 = vsel %vm2048_vm10, %v1985_v58, %v2080_v62  ;;  %vm2056_vm11 = vcmp.gt.f32.partialorder %v2009_v25, 0.0  ;;  %v2088_v59 = vmul.f32 0.1, %v2009_v25  ;;  %v1806_v22 = vsel %vm1776_vm8, %v1773_v54, %v1508_v5 }
 0x2f9   : > { %2144 = vst [vmem:[%s4425_s10 + $0x80] sm:$0xff] %v2112_v0  ;;  %2524 = vmatmul.msk.f32.gmra.mxu3 %vm1818_vm9, %v1806_v22  ;;  %v1782_v32 = vsel %vm1776_vm8, %v1749_v12, %v1460_v36  ;;  %v1750_v36 = vsel %vm1743_vm7, %v4125_v27, %v1334_v57 }
 0x2fa   : > { %v2120_v63 = vsel %vm2056_vm11, %v2009_v25, %v2088_v59  ;;  %2500 = vmatmul.msk.f32.gmra.mxu0 %vm1818_vm9, %v1782_v32 }
 0x2fb   : > { %2152 = vst [vmem:[%s4425_s10 + $0xc0] sm:$0xff] %v2120_v63 }
 0x2fd   : > { %v1960_v30 = vpop.f32.mrf.mxu1 }
 0x2fe   : > { %v1936_v3 = vpop.f32.mrf.mxu0  ;;  %v1961_v51 = vadd.f32 %v4411_v40, %v1960_v30  ;;  %v1254_v33 = vpop.permute.xlu1 %1253 }
 0x2ff   : > { %v1937_v60 = vadd.f32 %v4411_v40, %v1936_v3  ;;  %v1238_v19 = vpop.permute.xlu0 %1237  ;;  %v1741_v29 = vsel %vm1710_vm5, %v3915_v43, %v1254_v33  ;;  %v1256_v7 = vpop.permute.xlu2 %1255 }
 0x300   : > { %vm2040_vm12 = vcmp.gt.f32.partialorder %v1961_v51, 0.0  ;;  %v2072_v50 = vmul.f32 0.1, %v1961_v51  ;;  %v1733_v39 = vsel %vm1710_vm5, %v3956_v47, %v1238_v19  ;;  %v1774_v43 = vsel %vm1743_vm7, %v1741_v29, %v1382_v34 }
 0x301   : > { %vm2032_vm13 = vcmp.gt.f32.partialorder %v1937_v60, 0.0  ;;  %v2064_v9 = vmul.f32 0.1, %v1937_v60 }
 0x302   : > { %v2104_v46 = vsel %vm2040_vm12, %v1961_v51, %v2072_v50 }
 0x303   : > { %v2096_v45 = vsel %vm2032_vm13, %v1937_v60, %v2064_v9  ;;  %2136 = vst [vmem:[%s4425_s10 + $0x40] sm:$0xff] %v2104_v46 }
 0x304   : > { %2128 = vst [vmem:[%s4425_s10] sm:$0xff] %v2096_v45 }
 0x306   : > { %v1366_v52 = vpop.permute.xlu1 %1365 }
 0x307   : > { %v1476_v10 = vpop.permute.xlu0 %1475  ;;  %v1766_v16 = vsel %vm1743_vm7, %v1733_v39, %v1366_v52  ;;  %v1368_v23 = vpop.permute.xlu2 %1367 }
 0x308   : > { %v1790_v8 = vsel %vm1776_vm8, %v1757_v21, %v1476_v10 }
 0x309   : > { %2508 = vmatmul.msk.f32.gmra.mxu1 %vm1818_vm9, %v1790_v8 }
 0x30b   : > { %v1987_v15 = vpop.f32.mrf.mxu2 }
 0x30c   : > { %v1988_v49 = vadd.f32 %v4411_v40, %v1987_v15 }
 0x30d   : > { %v2011_v6 = vpop.f32.mrf.mxu3 }
 0x30e   : > { %vm2049_vm14 = vcmp.gt.f32.partialorder %v1988_v49, 0.0  ;;  %v2081_v26 = vmul.f32 0.1, %v1988_v49  ;;  %v2012_v48 = vadd.f32 %v4411_v40, %v2011_v6  ;;  %v1963_v44 = vpop.f32.mrf.mxu1  ;;  %v1510_v31 = vpop.permute.xlu1 %1509 }
 0x30f   : > { %v1494_v2 = vpop.permute.xlu0 %1493  ;;  %v1964_v18 = vadd.f32 %v4411_v40, %v1963_v44  ;;  %v1807_v11 = vsel %vm1776_vm8, %v1774_v43, %v1510_v31  ;;  %v1512_v5 = vpop.permute.xlu2 %1511 }
 0x310   : > { %v2113_v42 = vsel %vm2049_vm14, %v1988_v49, %v2081_v26  ;;  %vm2057_vm15 = vcmp.gt.f32.partialorder %v2012_v48, 0.0  ;;  %v2089_v1 = vmul.f32 0.1, %v2012_v48  ;;  %v1799_v47 = vsel %vm1776_vm8, %v1766_v16, %v1494_v2  ;;  %2525 = vmatmul.msk.f32.gmra.mxu3 %vm1818_vm9, %v1807_v11 }
 0x311   : > { %2145 = vst [vmem:[%s4425_s10 + $0x88] sm:$0xff] %v2113_v42  ;;  %vm2041_vm0 = vcmp.gt.f32.partialorder %v1964_v18, 0.0  ;;  %v2073_v53 = vmul.f32 0.1, %v1964_v18  ;;  %2517 = vmatmul.msk.f32.gmra.mxu2 %vm1818_vm9, %v1799_v47 }
 0x312   : > { %v2121_v13 = vsel %vm2057_vm15, %v2012_v48, %v2089_v1 }
 0x313   : > { %2153 = vst [vmem:[%s4425_s10 + $0xc8] sm:$0xff] %v2121_v13  ;;  %v2105_v35 = vsel %vm2041_vm0, %v1964_v18, %v2073_v53 }
 0x314   : > { %2137 = vst [vmem:[%s4425_s10 + $0x48] sm:$0xff] %v2105_v35 }
 0x315   : > { %v1939_v17 = vpop.f32.mrf.mxu0 }
 0x316   : > { %v1940_v28 = vadd.f32 %v4411_v40, %v1939_v17  ;;  %v1240_v4 = vpop.permute.xlu1 %1239 }
 0x317   : > { %v1350_v56 = vpop.permute.xlu0 %1349  ;;  %v1734_v12 = vsel %vm1710_vm5, %v3952_v55, %v1240_v4  ;;  %v1464_v9 = vpop.permute.xlu2 %1463 }
 0x318   : > { %vm2033_vm1 = vcmp.gt.f32.partialorder %v1940_v28, 0.0  ;;  %v2065_v24 = vmul.f32 0.1, %v1940_v28  ;;  %v1758_v14 = vsel %vm1743_vm7, %v4205_v20, %v1350_v56  ;;  %v1742_v20 = vsel %vm1710_vm5, %v4074_v38, %v1256_v7 }
 0x319   : > { %v1767_v22 = vsel %vm1743_vm7, %v1734_v12, %v1368_v23 }
 0x31a   : > { %v2097_v58 = vsel %vm2033_vm1, %v1940_v28, %v2065_v24 }
 0x31b   : > { %2129 = vst [vmem:[%s4425_s10 + $0x8] sm:$0xff] %v2097_v58 }
 0x31e   : > { %v1478_v62 = vpop.permute.xlu1 %1477 }
 0x31f   : > { %v1462_v25 = vpop.permute.xlu0 %1461  ;;  %v1791_v54 = vsel %vm1776_vm8, %v1758_v14, %v1478_v62 }
 0x320   : > { %v1783_v61 = vsel %vm1776_vm8, %v1750_v36, %v1462_v25  ;;  %2509 = vmatmul.msk.f32.gmra.mxu1 %vm1818_vm9, %v1791_v54 }
 0x321   : > { %2501 = vmatmul.msk.f32.gmra.mxu0 %vm1818_vm9, %v1783_v61 }
 0x325   : > { %v1990_v0 = vpop.f32.mrf.mxu2 }
 0x326   : > { %v1991_v27 = vadd.f32 %v4411_v40, %v1990_v0  ;;  %v1942_v59 = vpop.f32.mrf.mxu0  ;;  %v1496_v32 = vpop.permute.xlu1 %1495 }
 0x327   : > { %v1384_v63 = vpop.permute.xlu0 %1383  ;;  %v1943_v30 = vadd.f32 %v4411_v40, %v1942_v59  ;;  %v1800_v51 = vsel %vm1776_vm8, %v1767_v22, %v1496_v32 }
 0x328   : > { %vm2050_vm2 = vcmp.gt.f32.partialorder %v1991_v27, 0.0  ;;  %v2082_v3 = vmul.f32 0.1, %v1991_v27  ;;  %v1775_v55 = vsel %vm1743_vm7, %v1742_v20, %v1384_v63  ;;  %2518 = vmatmul.msk.f32.gmra.mxu2 %vm1818_vm9, %v1800_v51 }
 0x329   : > { %vm2034_vm3 = vcmp.gt.f32.partialorder %v1943_v30, 0.0  ;;  %v2066_v60 = vmul.f32 0.1, %v1943_v30  ;;  %v1808_v38 = vsel %vm1776_vm8, %v1775_v55, %v1512_v5 }
 0x32a   : > { %v2114_v33 = vsel %vm2050_vm2, %v1991_v27, %v2082_v3  ;;  %2526 = vmatmul.msk.f32.gmra.mxu3 %vm1818_vm9, %v1808_v38 }
 0x32b   : > { %2146 = vst [vmem:[%s4425_s10 + $0x90] sm:$0xff] %v2114_v33  ;;  %v2098_v19 = vsel %vm2034_vm3, %v1943_v30, %v2066_v60 }
 0x32c   : > { %2130 = vst [vmem:[%s4425_s10 + $0x10] sm:$0xff] %v2098_v19  ;;  %v2014_v34 = vpop.f32.mrf.mxu3 }
 0x32d   : > { %v2015_v50 = vadd.f32 %v4411_v40, %v2014_v34 }
 0x32e   : > { %v1352_v8 = vpop.permute.xlu1 %1351 }
 0x32f   : > { %vm2058_vm4 = vcmp.gt.f32.partialorder %v2015_v50, 0.0  ;;  %v2090_v46 = vmul.f32 0.1, %v2015_v50  ;;  %v1336_v45 = vpop.permute.xlu0 %1335  ;;  %v1759_v15 = vsel %vm1743_vm7, %v4201_v37, %v1352_v8 }
 0x330   : > { %v1751_v21 = vsel %vm1743_vm7, %v4031_v41, %v1336_v45 }
 0x331   : > { %v2122_v52 = vsel %vm2058_vm4, %v2015_v50, %v2090_v46  ;;  %v1784_v10 = vsel %vm1776_vm8, %v1751_v21, %v1464_v9 }
 0x332   : > { %2154 = vst [vmem:[%s4425_s10 + $0xd0] sm:$0xff] %v2122_v52  ;;  %2502 = vmatmul.msk.f32.gmra.mxu0 %vm1818_vm9, %v1784_v10 }
 0x336   : > { %v1966_v57 = vpop.f32.mrf.mxu1 }
 0x337   : > { %v1967_v29 = vadd.f32 %v4411_v40, %v1966_v57  ;;  %v1480_v49 = vpop.permute.xlu0 %1479 }
 0x338   : > { %v1792_v6 = vsel %vm1776_vm8, %v1759_v15, %v1480_v49 }
 0x339   : > { %vm2042_vm5 = vcmp.gt.f32.partialorder %v1967_v29, 0.0  ;;  %v2074_v41 = vmul.f32 0.1, %v1967_v29  ;;  %2510 = vmatmul.msk.f32.gmra.mxu1 %vm1818_vm9, %v1792_v6 }
 0x33b   : > { %v2106_v39 = vsel %vm2042_vm5, %v1967_v29, %v2074_v41 }
 0x33c   : > { %2138 = vst [vmem:[%s4425_s10 + $0x50] sm:$0xff] %v2106_v39 }
 0x343   : > { %v2017_v26 = vpop.f32.mrf.mxu3 }
 0x344   : > { %v1993_v48 = vpop.f32.mrf.mxu2  ;;  %v2018_v44 = vadd.f32 %v4411_v40, %v2017_v26 }
 0x345   : > { %v1994_v16 = vadd.f32 %v4411_v40, %v1993_v48 }
 0x346   : > { %vm2059_vm6 = vcmp.gt.f32.partialorder %v2018_v44, 0.0  ;;  %v2091_v37 = vmul.f32 0.1, %v2018_v44 }
 0x347   : > { %vm2051_vm7 = vcmp.gt.f32.partialorder %v1994_v16, 0.0  ;;  %v2083_v31 = vmul.f32 0.1, %v1994_v16 }
 0x348   : > { %v2123_v2 = vsel %vm2059_vm6, %v2018_v44, %v2091_v37 }
 0x349   : > { %v2115_v18 = vsel %vm2051_vm7, %v1994_v16, %v2083_v31  ;;  %2155 = vst [vmem:[%s4425_s10 + $0xd8] sm:$0xff] %v2123_v2 }
 0x34a   : > { %2147 = vst [vmem:[%s4425_s10 + $0x98] sm:$0xff] %v2115_v18 }
 0x34d   : > { %v1969_v43 = vpop.f32.mrf.mxu1 }
 0x34e   : > { %v1945_v42 = vpop.f32.mrf.mxu0  ;;  %v1970_v1 = vadd.f32 %v4411_v40, %v1969_v43 }
 0x34f   : > { %v1946_v47 = vadd.f32 %v4411_v40, %v1945_v42 }
 0x350   : > { %vm2043_vm8 = vcmp.gt.f32.partialorder %v1970_v1, 0.0  ;;  %v2075_v53 = vmul.f32 0.1, %v1970_v1 }
 0x351   : > { %vm2035_vm9 = vcmp.gt.f32.partialorder %v1946_v47, 0.0  ;;  %v2067_v11 = vmul.f32 0.1, %v1946_v47 }
 0x352   : > { %v2107_v13 = vsel %vm2043_vm8, %v1970_v1, %v2075_v53 }
 0x353   : > { %v2099_v35 = vsel %vm2035_vm9, %v1946_v47, %v2067_v11  ;;  %2139 = vst [vmem:[%s4425_s10 + $0x58] sm:$0xff] %v2107_v13 }
 0x354   : > { %2131 = vst [vmem:[%s4425_s10 + $0x18] sm:$0xff] %v2099_v35 }
 0x35b   : > { %v1996_v7 = vpop.f32.mrf.mxu2 }
 0x35c   : > { %v1997_v17 = vadd.f32 %v4411_v40, %v1996_v7 }
 0x35d   : > { %v2020_v28 = vpop.f32.mrf.mxu3 }
 0x35e   : > { %vm2052_vm10 = vcmp.gt.f32.partialorder %v1997_v17, 0.0  ;;  %v2084_v4 = vmul.f32 0.1, %v1997_v17  ;;  %v2021_v56 = vadd.f32 %v4411_v40, %v2020_v28  ;;  %v1972_v24 = vpop.f32.mrf.mxu1 }
 0x35f   : > { %v1973_v58 = vadd.f32 %v4411_v40, %v1972_v24 }
 0x360   : > { %v2116_v23 = vsel %vm2052_vm10, %v1997_v17, %v2084_v4  ;;  %vm2060_vm11 = vcmp.gt.f32.partialorder %v2021_v56, 0.0  ;;  %v2092_v36 = vmul.f32 0.1, %v2021_v56 }
 0x361   : > { %2148 = vst [vmem:[%s4425_s10 + $0xa0] sm:$0xff] %v2116_v23  ;;  %vm2044_vm12 = vcmp.gt.f32.partialorder %v1973_v58, 0.0  ;;  %v2076_v14 = vmul.f32 0.1, %v1973_v58 }
 0x362   : > { %v2124_v62 = vsel %vm2060_vm11, %v2021_v56, %v2092_v36 }
 0x363   : > { %2156 = vst [vmem:[%s4425_s10 + $0xe0] sm:$0xff] %v2124_v62  ;;  %v2108_v25 = vsel %vm2044_vm12, %v1973_v58, %v2076_v14 }
 0x364   : > { %2140 = vst [vmem:[%s4425_s10 + $0x60] sm:$0xff] %v2108_v25 }
 0x365   : > { %v1948_v61 = vpop.f32.mrf.mxu0 }
 0x366   : > { %v1949_v54 = vadd.f32 %v4411_v40, %v1948_v61 }
 0x368   : > { %vm2036_vm13 = vcmp.gt.f32.partialorder %v1949_v54, 0.0  ;;  %v2068_v12 = vmul.f32 0.1, %v1949_v54 }
 0x36a   : > { %v2100_v5 = vsel %vm2036_vm13, %v1949_v54, %v2068_v12 }
 0x36b   : > { %2132 = vst [vmem:[%s4425_s10 + $0x20] sm:$0xff] %v2100_v5 }
 0x375   : > { %v1999_v0 = vpop.f32.mrf.mxu2 }
 0x376   : > { %v2000_v27 = vadd.f32 %v4411_v40, %v1999_v0 }
 0x377   : > { %v1951_v59 = vpop.f32.mrf.mxu0 }
 0x378   : > { %vm2053_vm14 = vcmp.gt.f32.partialorder %v2000_v27, 0.0  ;;  %v2085_v20 = vmul.f32 0.1, %v2000_v27  ;;  %v1952_v22 = vadd.f32 %v4411_v40, %v1951_v59 }
 0x37a   : > { %v2117_v32 = vsel %vm2053_vm14, %v2000_v27, %v2085_v20  ;;  %vm2037_vm15 = vcmp.gt.f32.partialorder %v1952_v22, 0.0  ;;  %v2069_v63 = vmul.f32 0.1, %v1952_v22 }
 0x37b   : > { %2149 = vst [vmem:[%s4425_s10 + $0xa8] sm:$0xff] %v2117_v32 }
 0x37c   : > { %v2101_v30 = vsel %vm2037_vm15, %v1952_v22, %v2069_v63  ;;  %v2023_v3 = vpop.f32.mrf.mxu3 }
 0x37d   : > { %2133 = vst [vmem:[%s4425_s10 + $0x28] sm:$0xff] %v2101_v30  ;;  %v2024_v55 = vadd.f32 %v4411_v40, %v2023_v3 }
 0x37f   : > { %vm2061_vm0 = vcmp.gt.f32.partialorder %v2024_v55, 0.0  ;;  %v2093_v51 = vmul.f32 0.1, %v2024_v55 }
 0x381   : > { %v2125_v60 = vsel %vm2061_vm0, %v2024_v55, %v2093_v51 }
 0x382   : > { %2157 = vst [vmem:[%s4425_s10 + $0xe8] sm:$0xff] %v2125_v60 }
 0x386   : > { %v1975_v38 = vpop.f32.mrf.mxu1 }
 0x387   : > { %v1976_v33 = vadd.f32 %v4411_v40, %v1975_v38 }
 0x389   : > { %vm2045_vm1 = vcmp.gt.f32.partialorder %v1976_v33, 0.0  ;;  %v2077_v19 = vmul.f32 0.1, %v1976_v33 }
 0x38b   : > { %v2109_v34 = vsel %vm2045_vm1, %v1976_v33, %v2077_v19 }
 0x38c   : > { %2141 = vst [vmem:[%s4425_s10 + $0x68] sm:$0xff] %v2109_v34 }
 0x393   : > { %v2026_v46 = vpop.f32.mrf.mxu3 }
 0x394   : > { %v2002_v50 = vpop.f32.mrf.mxu2  ;;  %v2027_v45 = vadd.f32 %v4411_v40, %v2026_v46 }
 0x395   : > { %v2003_v9 = vadd.f32 %v4411_v40, %v2002_v50 }
 0x396   : > { %vm2062_vm3 = vcmp.gt.f32.partialorder %v2027_v45, 0.0  ;;  %v2094_v52 = vmul.f32 0.1, %v2027_v45 }
 0x397   : > { %vm2054_vm2 = vcmp.gt.f32.partialorder %v2003_v9, 0.0  ;;  %v2086_v21 = vmul.f32 0.1, %v2003_v9 }
 0x398   : > { %v2126_v8 = vsel %vm2062_vm3, %v2027_v45, %v2094_v52 }
 0x399   : > { %v2118_v10 = vsel %vm2054_vm2, %v2003_v9, %v2086_v21  ;;  %2158 = vst [vmem:[%s4425_s10 + $0xf0] sm:$0xff] %v2126_v8 }
 0x39a   : > { %2150 = vst [vmem:[%s4425_s10 + $0xb0] sm:$0xff] %v2118_v10 }
 0x39d   : > { %v1978_v15 = vpop.f32.mrf.mxu1 }
 0x39e   : > { %v1954_v57 = vpop.f32.mrf.mxu0  ;;  %v1979_v49 = vadd.f32 %v4411_v40, %v1978_v15 }
 0x39f   : > { %v1955_v29 = vadd.f32 %v4411_v40, %v1954_v57 }
 0x3a0   : > { %vm2046_vm5 = vcmp.gt.f32.partialorder %v1979_v49, 0.0  ;;  %v2078_v41 = vmul.f32 0.1, %v1979_v49 }
 0x3a1   : > { %vm2038_vm4 = vcmp.gt.f32.partialorder %v1955_v29, 0.0  ;;  %v2070_v6 = vmul.f32 0.1, %v1955_v29 }
 0x3a2   : > { %v2110_v26 = vsel %vm2046_vm5, %v1979_v49, %v2078_v41 }
 0x3a3   : > { %v2102_v39 = vsel %vm2038_vm4, %v1955_v29, %v2070_v6  ;;  %2142 = vst [vmem:[%s4425_s10 + $0x70] sm:$0xff] %v2110_v26 }
 0x3a4   : > { %2134 = vst [vmem:[%s4425_s10 + $0x30] sm:$0xff] %v2102_v39 }
 0x3ab   : > { %v2005_v48 = vpop.f32.mrf.mxu2 }
 0x3ac   : > { %v2006_v44 = vadd.f32 %v4411_v40, %v2005_v48 }
 0x3ad   : > { %v2029_v16 = vpop.f32.mrf.mxu3 }
 0x3ae   : > { %v2030_v37 = vadd.f32 %v4411_v40, %v2029_v16  ;;  %vm2055_vm6 = vcmp.gt.f32.partialorder %v2006_v44, 0.0  ;;  %v2087_v31 = vmul.f32 0.1, %v2006_v44 }
 0x3af   : > { %v1957_v2 = vpop.f32.mrf.mxu0 }
 0x3b0   : > { %vm2063_vm7 = vcmp.gt.f32.partialorder %v2030_v37, 0.0  ;;  %v2095_v18 = vmul.f32 0.1, %v2030_v37  ;;  %v1958_v43 = vadd.f32 %v4411_v40, %v1957_v2  ;;  %v2119_v42 = vsel %vm2055_vm6, %v2006_v44, %v2087_v31 }
 0x3b1   : > { %2151 = vst [vmem:[%s4425_s10 + $0xb8] sm:$0xff] %v2119_v42 }
 0x3b2   : > { %v2127_v1 = vsel %vm2063_vm7, %v2030_v37, %v2095_v18  ;;  %vm2039_vm8 = vcmp.gt.f32.partialorder %v1958_v43, 0.0  ;;  %v2071_v47 = vmul.f32 0.1, %v1958_v43 }
 0x3b3   : > { %2159 = vst [vmem:[%s4425_s10 + $0xf8] sm:$0xff] %v2127_v1 }
 0x3b4   : > { %v2103_v53 = vsel %vm2039_vm8, %v1958_v43, %v2071_v47 }
 0x3b5   : > { %2135 = vst [vmem:[%s4425_s10 + $0x38] sm:$0xff] %v2103_v53 }
 0x3b6   : > { %v1981_v11 = vpop.f32.mrf.mxu1 }
 0x3b7   : > { %v1982_v13 = vadd.f32 %v4411_v40, %v1981_v11 }
 0x3b9   : > { %vm2047_vm9 = vcmp.gt.f32.partialorder %v1982_v13, 0.0  ;;  %v2079_v35 = vmul.f32 0.1, %v1982_v13 }
 0x3bb   : > { %v2111_v7 = vsel %vm2047_vm9, %v1982_v13, %v2079_v35 }
 0x3bc   : > { %2143 = vst [vmem:[%s4425_s10 + $0x78] sm:$0xff] %v2111_v7 }
 0x3bd   : > { %2645 = shalt.err (!%p2642_p5)
}
 0x3be   : > { %s2706_s30 = smov 128  }
 0x3bf   : > { %2549 = dma.vmem_to_hbm [thread:$0]  (%p2767_p4), %s2177_s23, 4096, %s2179_s26, %s2161_s15, %s2706_s30, %s2706_s30, %s2699_s5  }
 0x3c0 PF: > { %p2555_p6 = scmp.ge.s32.totalorder %s2696_s17, 2  ;;  %s2193_s9 = sand.u32 1, %s2676_s12  }
 0x3c1   : > { %s2194_s10 = scalar_lea.sflag [#allocation3], %s2193_s9 }
 0x3c2   : > { %p2552_p7 = pnand %p2555_p6, %p2774_p8 }
 0x3c4   : > { %p2553_p9 = pneg %p2552_p7 }
 0x3c6   : > { %2671 = dma.done.wait (%p2553_p9), %s2194_s10, 4096  }
 0x3c7   : > { %2673 = vsyncadd (%p2553_p9), %s2194_s10, 4294963200  ;;  %s16_s17 = sadd.s32 1, %s2696_s17   ;;  %s4859_s12 = smov %s2680_s13 }
 0x3c8   : > { %p13_p10 = scmp.ge.s32.totalorder %s16_s17, 4   ;;  %s4860_s13 = smov %s2684_s14 }
 0x3c9   : > { %s4861_s14 = smov %s2780_s25  ;;  %s4862_s15 = smov %s2692_s16 }
 0x3ca   : > { %s4863_s16 = smov %s4865_s20  ;;  %15 = sbr.rel (!%p13_p10) target bundleno = 4 (0x4), region = 76 }
 0x3cf   :  { %2200 = vsyncpa [#allocation3], 1 }
 0x3d0   :  { %2202 = vsyncpa [#allocation3 + $0x1], 1 }

</bundles_post_ra>
